<compile_context>
chip_gen: v6e
topology: v6e:2x2x1
jax: 0.10.0
libtpu: 0.0.40
codegen_flags: <defaults>
</compile_context>

<pallas_src>
import functools

import jax
import jax.numpy as jnp
from jax.experimental import pallas as pl
from jax.experimental.pallas import tpu as pltpu


def lif_block_kernel(i_ref, x0_ref, b_ref, w_ref,
                     f_ref, r_ref, u_ref, x_ref, u_acc,
                     *, time_const, tt, batch, out_dim, compute_dtype):
    """Processes TT timesteps per grid step.

    i_ref : (TT*B, N)      input rows for this time block (pipelined)
    x0_ref: (B, N)         initial membrane state (resident)
    b_ref : (1, N)         bias (resident)
    w_ref : (N, OUT + N)   fused [W_f | W_r_eff] weights (resident, bf16/f32)
    f_ref : (TT*B, OUT)    output f rows for this block
    r_ref : (TT*B, N)      output r rows for this block
    u_ref : (TT*B, N)      output u rows for this block (f32)
    x_ref : (B, N)         membrane state (resident accumulator, 1 writeback)
    u_acc : (TT*B, N)      VMEM scratch holding u in the matmul compute dtype
    """
    gt = pl.program_id(0)

    # Initialize the carried state from x0 on the first time block.
    @pl.when(gt == 0)
    def _():
        x_ref[...] = x0_ref[...]

    b = b_ref[...]                        # (1, N), broadcasts over batch rows
    tc = time_const
    one_minus_tc = 1.0 - time_const

    # Elementwise LIF scan over the TT steps of this block (VPU work only).
    def step(s, x_prev):
        row = pl.multiple_of(s * batch, batch)
        dx = i_ref[pl.ds(row, batch), :] + b          # (B, N)
        x_new = one_minus_tc * x_prev + tc * dx       # f32 LIF update
        u = jnp.maximum(x_new, 0.0)                   # act_func = relu
        u_ref[pl.ds(row, batch), :] = u               # f32 u output
        u_acc[pl.ds(row, batch), :] = u.astype(compute_dtype)
        return x_new

    x_last = jax.lax.fori_loop(0, tt, step, x_ref[...], unroll=True)
    x_ref[...] = x_last

    # One MXU pass for the whole time block: (TT*B, N) @ (N, OUT + N),
    # f32 accumulation; split into two lane-dense output stores in-kernel.
    fr = jnp.dot(u_acc[...], w_ref[...], preferred_element_type=jnp.float32)
    f_ref[...] = fr[:, :out_dim].astype(f_ref.dtype)
    r_ref[...] = fr[:, out_dim:].astype(r_ref.dtype)


def neurons_lif_forward_seq(i_seq, x0, b, w_f, w_r, *, time_const=0.2,
                            noself=True, tt=16, use_bf16=True):
    """Run Neurons_LIF.forward over T timesteps inside one pallas_call.

    i_seq : (T, B, N_num) f32   per-timestep inputs
    x0    : (B, N_num)    f32   initial membrane state (self.x)
    b     : (N_num,)      f32
    w_f   : (N_num, output_num) f32
    w_r   : (N_num, N_num)      f32
    Returns (f_seq, r_seq, u_seq, x_final).
    """
    T, B, N = i_seq.shape
    OUT = w_f.shape[1]

    # Pick a time-block size that divides T.
    tt = max(1, min(int(tt), T))
    while T % tt:
        tt -= 1
    n_blocks = T // tt
    rows = tt * B

    # --- weight preprocessing (once per call, not per timestep) -------------
    if noself:
        w_r_eff = w_r * (1.0 - jnp.eye(N, dtype=w_r.dtype))
    else:
        w_r_eff = w_r
    compute_dtype = jnp.bfloat16 if use_bf16 else jnp.float32
    # Fuse W_f and W_r into a single (N, OUT + N) RHS -> one MXU pass / block.
    w_cat = jnp.concatenate([w_f, w_r_eff], axis=1).astype(compute_dtype)
    b2d = b.reshape(1, N).astype(jnp.float32)

    # Free reshape: time and batch collapse into the matmul M dimension.
    i_flat = i_seq.reshape(T * B, N)

    kern = functools.partial(
        lif_block_kernel, time_const=float(time_const), tt=tt, batch=B,
        out_dim=OUT, compute_dtype=compute_dtype)

    w_itemsize = 2 if use_bf16 else 4
    flops = 2 * T * B * N * (OUT + N) + 6 * T * B * N
    bytes_accessed = (4 * T * B * N                       # i_
                      + w_itemsize * N * (OUT + N)        # W_cat
                      + 4 * (N + B * N)                   # b, x0
                      + 4 * (T * B * (OUT + 2 * N) + B * N))  # f, r, u, x

    f_flat, r_flat, u_flat, x_final = pl.pallas_call(
        kern,
        out_shape=(
            jax.ShapeDtypeStruct((T * B, OUT), jnp.float32),   # f
            jax.ShapeDtypeStruct((T * B, N), jnp.float32),     # r
            jax.ShapeDtypeStruct((T * B, N), jnp.float32),     # u
            jax.ShapeDtypeStruct((B, N), jnp.float32),         # final x
        ),
        grid=(n_blocks,),
        in_specs=[
            pl.BlockSpec((rows, N), lambda t: (t, 0)),         # i_ (pipelined)
            pl.BlockSpec((B, N), lambda t: (0, 0)),            # x0 (resident)
            pl.BlockSpec((1, N), lambda t: (0, 0)),            # bias (resident)
            pl.BlockSpec((N, OUT + N), lambda t: (0, 0)),      # W_cat (resident)
        ],
        out_specs=(
            pl.BlockSpec((rows, OUT), lambda t: (t, 0)),       # f
            pl.BlockSpec((rows, N), lambda t: (t, 0)),         # r
            pl.BlockSpec((rows, N), lambda t: (t, 0)),         # u
            pl.BlockSpec((B, N), lambda t: (0, 0)),            # x (1 writeback)
        ),
        scratch_shapes=[pltpu.VMEM((rows, N), compute_dtype)],
        compiler_params=pltpu.CompilerParams(
            # Time-block axis carries the membrane state -> "arbitrary".
            dimension_semantics=("arbitrary",)),
        cost_estimate=pl.CostEstimate(
            flops=int(flops), transcendentals=0,
            bytes_accessed=int(bytes_accessed)),
    )(i_flat, x0, b2d, w_cat)

    # Free reshapes back to (T, B, ...) — no HBM copies.
    f_seq = f_flat.reshape(T, B, OUT)
    r_seq = r_flat.reshape(T, B, N)
    u_seq = u_flat.reshape(T, B, N)
    return f_seq, r_seq, u_seq, x_final


def neurons_lif_forward(i_, x_prev, b, w_f, w_r, *, time_const=0.2,
                        noself=True, use_bf16=True):
    """Single-timestep convenience wrapper matching module.forward exactly."""
    f_seq, r_seq, u_seq, x_new = neurons_lif_forward_seq(
        i_[None], x_prev, b, w_f, w_r, time_const=time_const, noself=noself,
        tt=1, use_bf16=use_bf16)
    return f_seq[0], r_seq[0], u_seq[0], x_new


def reference_forward_seq(i_seq, x0, b, w_f, w_r, *, time_const=0.2,
                          noself=True):
    """Pure-JAX reference mirroring T calls of the PyTorch forward."""
    if noself:
        w_r_eff = w_r * (1.0 - jnp.eye(w_r.shape[0], dtype=w_r.dtype))
    else:
        w_r_eff = w_r

    def step(x, i_t):
        dx = i_t + b[None, :]
        x_new = (1.0 - time_const) * x + time_const * dx
        u = jnp.maximum(x_new, 0.0)
        f = u @ w_f
        r = u @ w_r_eff
        return x_new, (f, r, u)

    x_final, (f_seq, r_seq, u_seq) = jax.lax.scan(step, x0, i_seq)
    return f_seq, r_seq, u_seq, x_final


if __name__ == "__main__":
    # Small shapes consistent with the module (vreg/MXU-friendly).
    B = 8          # batch_size
    N_NUM = 128    # N_num (recurrent population size)
    OUT = 128      # output_num
    T = 64         # number of recurrent timesteps
    TT = 16        # timesteps per grid step (time block)
    TIME_CONST = 0.2

    key = jax.random.PRNGKey(0)
    k_i, k_f, k_r, k_b = jax.random.split(key, 4)

    i_seq = jax.random.normal(k_i, (T, B, N_NUM), dtype=jnp.float32)
    w_f = 0.1 * jax.random.normal(k_f, (N_NUM, OUT), dtype=jnp.float32)
    w_r = 0.1 * jax.random.normal(k_r, (N_NUM, N_NUM), dtype=jnp.float32)
    b = 0.1 * jax.random.normal(k_b, (N_NUM,), dtype=jnp.float32)
    x0 = jnp.zeros((B, N_NUM), dtype=jnp.float32)  # reset_x_zero

    f_ref, r_ref, u_ref, x_ref = reference_forward_seq(
        i_seq, x0, b, w_f, w_r, time_const=TIME_CONST, noself=True)

    # --- default fast path: bf16 matmul operands, f32 accumulation ----------
    f_seq, r_seq, u_seq, x_final = neurons_lif_forward_seq(
        i_seq, x0, b, w_f, w_r, time_const=TIME_CONST, noself=True,
        tt=TT, use_bf16=True)
    jax.block_until_ready((f_seq, r_seq, u_seq, x_final))

    # LIF state / u are computed entirely in f32 -> tight match.
    assert jnp.allclose(u_seq, u_ref, atol=1e-5, rtol=1e-5)
    assert jnp.allclose(x_final, x_ref, atol=1e-5, rtol=1e-5)
    # f / r go through the bf16 MXU path -> looser tolerance.
    assert jnp.allclose(f_seq, f_ref, atol=2e-2, rtol=2e-2)
    assert jnp.allclose(r_seq, r_ref, atol=2e-2, rtol=2e-2)

    # --- f32 matmul path: near bit-exact against the reference --------------
    f32_f, f32_r, f32_u, f32_x = neurons_lif_forward_seq(
        i_seq, x0, b, w_f, w_r, time_const=TIME_CONST, noself=True,
        tt=TT, use_bf16=False)
    jax.block_until_ready((f32_f, f32_r, f32_u, f32_x))
    assert jnp.allclose(f32_f, f_ref, atol=1e-4, rtol=1e-4)
    assert jnp.allclose(f32_r, r_ref, atol=1e-4, rtol=1e-4)
    assert jnp.allclose(f32_u, u_ref, atol=1e-5, rtol=1e-5)
    assert jnp.allclose(f32_x, x_ref, atol=1e-5, rtol=1e-5)

    # --- single-step path (module.forward semantics) -------------------------
    f1, r1, u1, x1 = neurons_lif_forward(
        i_seq[0], x0, b, w_f, w_r, time_const=TIME_CONST, noself=True,
        use_bf16=False)
    jax.block_until_ready((f1, r1, u1, x1))
    assert jnp.allclose(f1, f_ref[0], atol=1e-4, rtol=1e-4)
    assert jnp.allclose(r1, r_ref[0], atol=1e-4, rtol=1e-4)
    assert jnp.allclose(u1, u_ref[0], atol=1e-5, rtol=1e-5)

    print("KERNEL_OK")
</pallas_src>

<mosaic_0001>
module attributes {stable_mosaic.version = 11 : i64} {
  func.func @lif_block_kernel(%arg0: i32, %arg1: memref<128x128xf32, #tpu.memory_space<vmem>>, %arg2: memref<8x128xf32, #tpu.memory_space<vmem>>, %arg3: memref<1x128xf32, #tpu.memory_space<vmem>>, %arg4: memref<128x256xbf16, #tpu.memory_space<vmem>>, %arg5: memref<128x128xf32, #tpu.memory_space<vmem>>, %arg6: memref<128x128xf32, #tpu.memory_space<vmem>>, %arg7: memref<128x128xf32, #tpu.memory_space<vmem>>, %arg8: memref<8x128xf32, #tpu.memory_space<vmem>>, %arg9: memref<128x128xbf16, #tpu.memory_space<vmem>>) attributes {dimension_semantics = [#tpu.dimension_semantics<arbitrary>], iteration_bounds = array<i64: 4>, scalar_prefetch = 0 : i64, scratch_operands = 1 : i64, tpu.core_type = #tpu.core_type<tc>, window_params = [{transform_indices = @transform_0, window_bounds = array<i64: 128, 128>}, {pipeline_mode = #tpu.pipeline_mode<synchronous>, transform_indices = @transform_1, window_bounds = array<i64: 8, 128>}, {pipeline_mode = #tpu.pipeline_mode<synchronous>, transform_indices = @transform_2, window_bounds = array<i64: 1, 128>}, {pipeline_mode = #tpu.pipeline_mode<synchronous>, transform_indices = @transform_3, window_bounds = array<i64: 128, 256>}, {transform_indices = @transform_4, window_bounds = array<i64: 128, 128>}, {transform_indices = @transform_5, window_bounds = array<i64: 128, 128>}, {transform_indices = @transform_6, window_bounds = array<i64: 128, 128>}, {pipeline_mode = #tpu.pipeline_mode<synchronous>, transform_indices = @transform_7, window_bounds = array<i64: 8, 128>}]} {
    %c0_i32 = arith.constant 0 : i32
    %0 = arith.cmpi eq, %arg0, %c0_i32 : i32
    %1 = arith.extui %0 : i1 to i32
    %c0_i32_0 = arith.constant 0 : i32
    %2 = arith.cmpi ne, %1, %c0_i32_0 : i32
    scf.if %2 {
      %c0_127 = arith.constant 0 : index
      %c0_128 = arith.constant 0 : index
      %301 = vector.load %arg2[%c0_127, %c0_128] : memref<8x128xf32, #tpu.memory_space<vmem>>, vector<8x128xf32>
      %c0_129 = arith.constant 0 : index
      %c0_130 = arith.constant 0 : index
      %302 = vector.load %arg8[%c0_129, %c0_130] : memref<8x128xf32, #tpu.memory_space<vmem>>, vector<8x128xf32>
      tpu.vector_store %arg8[%c0_129, %c0_130], %301 {strides = array<i32>} : memref<8x128xf32, #tpu.memory_space<vmem>>, vector<8x128xf32>,
    } else {
    }
    %c0 = arith.constant 0 : index
    %c0_1 = arith.constant 0 : index
    %3 = vector.load %arg3[%c0, %c0_1] : memref<1x128xf32, #tpu.memory_space<vmem>>, vector<1x128xf32>
    %c0_2 = arith.constant 0 : index
    %c0_3 = arith.constant 0 : index
    %4 = vector.load %arg8[%c0_2, %c0_3] : memref<8x128xf32, #tpu.memory_space<vmem>>, vector<8x128xf32>
    %c0_i32_4 = arith.constant 0 : i32
    %c8_i32 = arith.constant 8 : i32
    %5 = arith.muli %c0_i32_4, %c8_i32 : i32
    %6 = tpu.assume_multiple %5, 8 : i32
    %7 = arith.index_cast %6 : i32 to index
    %c0_5 = arith.constant 0 : index
    %8 = vector.load %arg1[%7, %c0_5] : memref<128x128xf32, #tpu.memory_space<vmem>>, vector<8x128xf32>
    %9 = vector.broadcast %3 : vector<1x128xf32> to vector<8x128xf32>
    %10 = arith.addf %8, %9 : vector<8x128xf32>
    %cst = arith.constant 8.000000e-01 : f32
    %11 = vector.broadcast %cst : f32 to vector<8x128xf32>
    %12 = arith.mulf %11, %4 : vector<8x128xf32>
    %cst_6 = arith.constant 2.000000e-01 : f32
    %13 = vector.broadcast %cst_6 : f32 to vector<8x128xf32>
    %14 = arith.mulf %13, %10 : vector<8x128xf32>
    %15 = arith.addf %12, %14 : vector<8x128xf32>
    %cst_7 = arith.constant 0.000000e+00 : f32
    %16 = vector.broadcast %cst_7 : f32 to vector<8x128xf32>
    %17 = arith.maximumf %15, %16 : vector<8x128xf32>
    %18 = arith.index_cast %6 : i32 to index
    %c0_8 = arith.constant 0 : index
    %19 = vector.load %arg7[%18, %c0_8] : memref<128x128xf32, #tpu.memory_space<vmem>>, vector<8x128xf32>
    tpu.vector_store %arg7[%18, %c0_8], %17 {strides = array<i32>} : memref<128x128xf32, #tpu.memory_space<vmem>>, vector<8x128xf32>,
    %20 = arith.truncf %17 : vector<8x128xf32> to vector<8x128xbf16>
    %21 = arith.index_cast %6 : i32 to index
    %c0_9 = arith.constant 0 : index
    %22 = vector.load %arg9[%21, %c0_9] : memref<128x128xbf16, #tpu.memory_space<vmem>>, vector<8x128xbf16>
    tpu.vector_store %arg9[%21, %c0_9], %20 {strides = array<i32>} : memref<128x128xbf16, #tpu.memory_space<vmem>>, vector<8x128xbf16>,
    %c1_i32 = arith.constant 1 : i32
    %c8_i32_10 = arith.constant 8 : i32
    %23 = arith.muli %c1_i32, %c8_i32_10 : i32
    %24 = tpu.assume_multiple %23, 8 : i32
    %25 = arith.index_cast %24 : i32 to index
    %c0_11 = arith.constant 0 : index
    %26 = vector.load %arg1[%25, %c0_11] : memref<128x128xf32, #tpu.memory_space<vmem>>, vector<8x128xf32>
    %27 = vector.broadcast %3 : vector<1x128xf32> to vector<8x128xf32>
    %28 = arith.addf %26, %27 : vector<8x128xf32>
    %cst_12 = arith.constant 8.000000e-01 : f32
    %29 = vector.broadcast %cst_12 : f32 to vector<8x128xf32>
    %30 = arith.mulf %29, %15 : vector<8x128xf32>
    %cst_13 = arith.constant 2.000000e-01 : f32
    %31 = vector.broadcast %cst_13 : f32 to vector<8x128xf32>
    %32 = arith.mulf %31, %28 : vector<8x128xf32>
    %33 = arith.addf %30, %32 : vector<8x128xf32>
    %cst_14 = arith.constant 0.000000e+00 : f32
    %34 = vector.broadcast %cst_14 : f32 to vector<8x128xf32>
    %35 = arith.maximumf %33, %34 : vector<8x128xf32>
    %36 = arith.index_cast %24 : i32 to index
    %c0_15 = arith.constant 0 : index
    %37 = vector.load %arg7[%36, %c0_15] : memref<128x128xf32, #tpu.memory_space<vmem>>, vector<8x128xf32>
    tpu.vector_store %arg7[%36, %c0_15], %35 {strides = array<i32>} : memref<128x128xf32, #tpu.memory_space<vmem>>, vector<8x128xf32>,
    %38 = arith.truncf %35 : vector<8x128xf32> to vector<8x128xbf16>
    %39 = arith.index_cast %24 : i32 to index
    %c0_16 = arith.constant 0 : index
    %40 = vector.load %arg9[%39, %c0_16] : memref<128x128xbf16, #tpu.memory_space<vmem>>, vector<8x128xbf16>
    tpu.vector_store %arg9[%39, %c0_16], %38 {strides = array<i32>} : memref<128x128xbf16, #tpu.memory_space<vmem>>, vector<8x128xbf16>,
    %c2_i32 = arith.constant 2 : i32
    %c8_i32_17 = arith.constant 8 : i32
    %41 = arith.muli %c2_i32, %c8_i32_17 : i32
    %42 = tpu.assume_multiple %41, 8 : i32
    %43 = arith.index_cast %42 : i32 to index
    %c0_18 = arith.constant 0 : index
    %44 = vector.load %arg1[%43, %c0_18] : memref<128x128xf32, #tpu.memory_space<vmem>>, vector<8x128xf32>
    %45 = vector.broadcast %3 : vector<1x128xf32> to vector<8x128xf32>
    %46 = arith.addf %44, %45 : vector<8x128xf32>
    %cst_19 = arith.constant 8.000000e-01 : f32
    %47 = vector.broadcast %cst_19 : f32 to vector<8x128xf32>
    %48 = arith.mulf %47, %33 : vector<8x128xf32>
    %cst_20 = arith.constant 2.000000e-01 : f32
    %49 = vector.broadcast %cst_20 : f32 to vector<8x128xf32>
    %50 = arith.mulf %49, %46 : vector<8x128xf32>
    %51 = arith.addf %48, %50 : vector<8x128xf32>
    %cst_21 = arith.constant 0.000000e+00 : f32
    %52 = vector.broadcast %cst_21 : f32 to vector<8x128xf32>
    %53 = arith.maximumf %51, %52 : vector<8x128xf32>
    %54 = arith.index_cast %42 : i32 to index
    %c0_22 = arith.constant 0 : index
    %55 = vector.load %arg7[%54, %c0_22] : memref<128x128xf32, #tpu.memory_space<vmem>>, vector<8x128xf32>
    tpu.vector_store %arg7[%54, %c0_22], %53 {strides = array<i32>} : memref<128x128xf32, #tpu.memory_space<vmem>>, vector<8x128xf32>,
    %56 = arith.truncf %53 : vector<8x128xf32> to vector<8x128xbf16>
    %57 = arith.index_cast %42 : i32 to index
    %c0_23 = arith.constant 0 : index
    %58 = vector.load %arg9[%57, %c0_23] : memref<128x128xbf16, #tpu.memory_space<vmem>>, vector<8x128xbf16>
    tpu.vector_store %arg9[%57, %c0_23], %56 {strides = array<i32>} : memref<128x128xbf16, #tpu.memory_space<vmem>>, vector<8x128xbf16>,
    %c3_i32 = arith.constant 3 : i32
    %c8_i32_24 = arith.constant 8 : i32
    %59 = arith.muli %c3_i32, %c8_i32_24 : i32
    %60 = tpu.assume_multiple %59, 8 : i32
    %61 = arith.index_cast %60 : i32 to index
    %c0_25 = arith.constant 0 : index
    %62 = vector.load %arg1[%61, %c0_25] : memref<128x128xf32, #tpu.memory_space<vmem>>, vector<8x128xf32>
    %63 = vector.broadcast %3 : vector<1x128xf32> to vector<8x128xf32>
    %64 = arith.addf %62, %63 : vector<8x128xf32>
    %cst_26 = arith.constant 8.000000e-01 : f32
    %65 = vector.broadcast %cst_26 : f32 to vector<8x128xf32>
    %66 = arith.mulf %65, %51 : vector<8x128xf32>
    %cst_27 = arith.constant 2.000000e-01 : f32
    %67 = vector.broadcast %cst_27 : f32 to vector<8x128xf32>
    %68 = arith.mulf %67, %64 : vector<8x128xf32>
    %69 = arith.addf %66, %68 : vector<8x128xf32>
    %cst_28 = arith.constant 0.000000e+00 : f32
    %70 = vector.broadcast %cst_28 : f32 to vector<8x128xf32>
    %71 = arith.maximumf %69, %70 : vector<8x128xf32>
    %72 = arith.index_cast %60 : i32 to index
    %c0_29 = arith.constant 0 : index
    %73 = vector.load %arg7[%72, %c0_29] : memref<128x128xf32, #tpu.memory_space<vmem>>, vector<8x128xf32>
    tpu.vector_store %arg7[%72, %c0_29], %71 {strides = array<i32>} : memref<128x128xf32, #tpu.memory_space<vmem>>, vector<8x128xf32>,
    %74 = arith.truncf %71 : vector<8x128xf32> to vector<8x128xbf16>
    %75 = arith.index_cast %60 : i32 to index
    %c0_30 = arith.constant 0 : index
    %76 = vector.load %arg9[%75, %c0_30] : memref<128x128xbf16, #tpu.memory_space<vmem>>, vector<8x128xbf16>
    tpu.vector_store %arg9[%75, %c0_30], %74 {strides = array<i32>} : memref<128x128xbf16, #tpu.memory_space<vmem>>, vector<8x128xbf16>,
    %c4_i32 = arith.constant 4 : i32
    %c8_i32_31 = arith.constant 8 : i32
    %77 = arith.muli %c4_i32, %c8_i32_31 : i32
    %78 = tpu.assume_multiple %77, 8 : i32
    %79 = arith.index_cast %78 : i32 to index
    %c0_32 = arith.constant 0 : index
    %80 = vector.load %arg1[%79, %c0_32] : memref<128x128xf32, #tpu.memory_space<vmem>>, vector<8x128xf32>
    %81 = vector.broadcast %3 : vector<1x128xf32> to vector<8x128xf32>
    %82 = arith.addf %80, %81 : vector<8x128xf32>
    %cst_33 = arith.constant 8.000000e-01 : f32
    %83 = vector.broadcast %cst_33 : f32 to vector<8x128xf32>
    %84 = arith.mulf %83, %69 : vector<8x128xf32>
    %cst_34 = arith.constant 2.000000e-01 : f32
    %85 = vector.broadcast %cst_34 : f32 to vector<8x128xf32>
    %86 = arith.mulf %85, %82 : vector<8x128xf32>
    %87 = arith.addf %84, %86 : vector<8x128xf32>
    %cst_35 = arith.constant 0.000000e+00 : f32
    %88 = vector.broadcast %cst_35 : f32 to vector<8x128xf32>
    %89 = arith.maximumf %87, %88 : vector<8x128xf32>
    %90 = arith.index_cast %78 : i32 to index
    %c0_36 = arith.constant 0 : index
    %91 = vector.load %arg7[%90, %c0_36] : memref<128x128xf32, #tpu.memory_space<vmem>>, vector<8x128xf32>
    tpu.vector_store %arg7[%90, %c0_36], %89 {strides = array<i32>} : memref<128x128xf32, #tpu.memory_space<vmem>>, vector<8x128xf32>,
    %92 = arith.truncf %89 : vector<8x128xf32> to vector<8x128xbf16>
    %93 = arith.index_cast %78 : i32 to index
    %c0_37 = arith.constant 0 : index
    %94 = vector.load %arg9[%93, %c0_37] : memref<128x128xbf16, #tpu.memory_space<vmem>>, vector<8x128xbf16>
    tpu.vector_store %arg9[%93, %c0_37], %92 {strides = array<i32>} : memref<128x128xbf16, #tpu.memory_space<vmem>>, vector<8x128xbf16>,
    %c5_i32 = arith.constant 5 : i32
    %c8_i32_38 = arith.constant 8 : i32
    %95 = arith.muli %c5_i32, %c8_i32_38 : i32
    %96 = tpu.assume_multiple %95, 8 : i32
    %97 = arith.index_cast %96 : i32 to index
    %c0_39 = arith.constant 0 : index
    %98 = vector.load %arg1[%97, %c0_39] : memref<128x128xf32, #tpu.memory_space<vmem>>, vector<8x128xf32>
    %99 = vector.broadcast %3 : vector<1x128xf32> to vector<8x128xf32>
    %100 = arith.addf %98, %99 : vector<8x128xf32>
    %cst_40 = arith.constant 8.000000e-01 : f32
    %101 = vector.broadcast %cst_40 : f32 to vector<8x128xf32>
    %102 = arith.mulf %101, %87 : vector<8x128xf32>
    %cst_41 = arith.constant 2.000000e-01 : f32
    %103 = vector.broadcast %cst_41 : f32 to vector<8x128xf32>
    %104 = arith.mulf %103, %100 : vector<8x128xf32>
    %105 = arith.addf %102, %104 : vector<8x128xf32>
    %cst_42 = arith.constant 0.000000e+00 : f32
    %106 = vector.broadcast %cst_42 : f32 to vector<8x128xf32>
    %107 = arith.maximumf %105, %106 : vector<8x128xf32>
    %108 = arith.index_cast %96 : i32 to index
    %c0_43 = arith.constant 0 : index
    %109 = vector.load %arg7[%108, %c0_43] : memref<128x128xf32, #tpu.memory_space<vmem>>, vector<8x128xf32>
    tpu.vector_store %arg7[%108, %c0_43], %107 {strides = array<i32>} : memref<128x128xf32, #tpu.memory_space<vmem>>, vector<8x128xf32>,
    %110 = arith.truncf %107 : vector<8x128xf32> to vector<8x128xbf16>
    %111 = arith.index_cast %96 : i32 to index
    %c0_44 = arith.constant 0 : index
    %112 = vector.load %arg9[%111, %c0_44] : memref<128x128xbf16, #tpu.memory_space<vmem>>, vector<8x128xbf16>
    tpu.vector_store %arg9[%111, %c0_44], %110 {strides = array<i32>} : memref<128x128xbf16, #tpu.memory_space<vmem>>, vector<8x128xbf16>,
    %c6_i32 = arith.constant 6 : i32
    %c8_i32_45 = arith.constant 8 : i32
    %113 = arith.muli %c6_i32, %c8_i32_45 : i32
    %114 = tpu.assume_multiple %113, 8 : i32
    %115 = arith.index_cast %114 : i32 to index
    %c0_46 = arith.constant 0 : index
    %116 = vector.load %arg1[%115, %c0_46] : memref<128x128xf32, #tpu.memory_space<vmem>>, vector<8x128xf32>
    %117 = vector.broadcast %3 : vector<1x128xf32> to vector<8x128xf32>
    %118 = arith.addf %116, %117 : vector<8x128xf32>
    %cst_47 = arith.constant 8.000000e-01 : f32
    %119 = vector.broadcast %cst_47 : f32 to vector<8x128xf32>
    %120 = arith.mulf %119, %105 : vector<8x128xf32>
    %cst_48 = arith.constant 2.000000e-01 : f32
    %121 = vector.broadcast %cst_48 : f32 to vector<8x128xf32>
    %122 = arith.mulf %121, %118 : vector<8x128xf32>
    %123 = arith.addf %120, %122 : vector<8x128xf32>
    %cst_49 = arith.constant 0.000000e+00 : f32
    %124 = vector.broadcast %cst_49 : f32 to vector<8x128xf32>
    %125 = arith.maximumf %123, %124 : vector<8x128xf32>
    %126 = arith.index_cast %114 : i32 to index
    %c0_50 = arith.constant 0 : index
    %127 = vector.load %arg7[%126, %c0_50] : memref<128x128xf32, #tpu.memory_space<vmem>>, vector<8x128xf32>
    tpu.vector_store %arg7[%126, %c0_50], %125 {strides = array<i32>} : memref<128x128xf32, #tpu.memory_space<vmem>>, vector<8x128xf32>,
    %128 = arith.truncf %125 : vector<8x128xf32> to vector<8x128xbf16>
    %129 = arith.index_cast %114 : i32 to index
    %c0_51 = arith.constant 0 : index
    %130 = vector.load %arg9[%129, %c0_51] : memref<128x128xbf16, #tpu.memory_space<vmem>>, vector<8x128xbf16>
    tpu.vector_store %arg9[%129, %c0_51], %128 {strides = array<i32>} : memref<128x128xbf16, #tpu.memory_space<vmem>>, vector<8x128xbf16>,
    %c7_i32 = arith.constant 7 : i32
    %c8_i32_52 = arith.constant 8 : i32
    %131 = arith.muli %c7_i32, %c8_i32_52 : i32
    %132 = tpu.assume_multiple %131, 8 : i32
    %133 = arith.index_cast %132 : i32 to index
    %c0_53 = arith.constant 0 : index
    %134 = vector.load %arg1[%133, %c0_53] : memref<128x128xf32, #tpu.memory_space<vmem>>, vector<8x128xf32>
    %135 = vector.broadcast %3 : vector<1x128xf32> to vector<8x128xf32>
    %136 = arith.addf %134, %135 : vector<8x128xf32>
    %cst_54 = arith.constant 8.000000e-01 : f32
    %137 = vector.broadcast %cst_54 : f32 to vector<8x128xf32>
    %138 = arith.mulf %137, %123 : vector<8x128xf32>
    %cst_55 = arith.constant 2.000000e-01 : f32
    %139 = vector.broadcast %cst_55 : f32 to vector<8x128xf32>
    %140 = arith.mulf %139, %136 : vector<8x128xf32>
    %141 = arith.addf %138, %140 : vector<8x128xf32>
    %cst_56 = arith.constant 0.000000e+00 : f32
    %142 = vector.broadcast %cst_56 : f32 to vector<8x128xf32>
    %143 = arith.maximumf %141, %142 : vector<8x128xf32>
    %144 = arith.index_cast %132 : i32 to index
    %c0_57 = arith.constant 0 : index
    %145 = vector.load %arg7[%144, %c0_57] : memref<128x128xf32, #tpu.memory_space<vmem>>, vector<8x128xf32>
    tpu.vector_store %arg7[%144, %c0_57], %143 {strides = array<i32>} : memref<128x128xf32, #tpu.memory_space<vmem>>, vector<8x128xf32>,
    %146 = arith.truncf %143 : vector<8x128xf32> to vector<8x128xbf16>
    %147 = arith.index_cast %132 : i32 to index
    %c0_58 = arith.constant 0 : index
    %148 = vector.load %arg9[%147, %c0_58] : memref<128x128xbf16, #tpu.memory_space<vmem>>, vector<8x128xbf16>
    tpu.vector_store %arg9[%147, %c0_58], %146 {strides = array<i32>} : memref<128x128xbf16, #tpu.memory_space<vmem>>, vector<8x128xbf16>,
    %c8_i32_59 = arith.constant 8 : i32
    %c8_i32_60 = arith.constant 8 : i32
    %149 = arith.muli %c8_i32_59, %c8_i32_60 : i32
    %150 = tpu.assume_multiple %149, 8 : i32
    %151 = arith.index_cast %150 : i32 to index
    %c0_61 = arith.constant 0 : index
    %152 = vector.load %arg1[%151, %c0_61] : memref<128x128xf32, #tpu.memory_space<vmem>>, vector<8x128xf32>
    %153 = vector.broadcast %3 : vector<1x128xf32> to vector<8x128xf32>
    %154 = arith.addf %152, %153 : vector<8x128xf32>
    %cst_62 = arith.constant 8.000000e-01 : f32
    %155 = vector.broadcast %cst_62 : f32 to vector<8x128xf32>
    %156 = arith.mulf %155, %141 : vector<8x128xf32>
    %cst_63 = arith.constant 2.000000e-01 : f32
    %157 = vector.broadcast %cst_63 : f32 to vector<8x128xf32>
    %158 = arith.mulf %157, %154 : vector<8x128xf32>
    %159 = arith.addf %156, %158 : vector<8x128xf32>
    %cst_64 = arith.constant 0.000000e+00 : f32
    %160 = vector.broadcast %cst_64 : f32 to vector<8x128xf32>
    %161 = arith.maximumf %159, %160 : vector<8x128xf32>
    %162 = arith.index_cast %150 : i32 to index
    %c0_65 = arith.constant 0 : index
    %163 = vector.load %arg7[%162, %c0_65] : memref<128x128xf32, #tpu.memory_space<vmem>>, vector<8x128xf32>
    tpu.vector_store %arg7[%162, %c0_65], %161 {strides = array<i32>} : memref<128x128xf32, #tpu.memory_space<vmem>>, vector<8x128xf32>,
    %164 = arith.truncf %161 : vector<8x128xf32> to vector<8x128xbf16>
    %165 = arith.index_cast %150 : i32 to index
    %c0_66 = arith.constant 0 : index
    %166 = vector.load %arg9[%165, %c0_66] : memref<128x128xbf16, #tpu.memory_space<vmem>>, vector<8x128xbf16>
    tpu.vector_store %arg9[%165, %c0_66], %164 {strides = array<i32>} : memref<128x128xbf16, #tpu.memory_space<vmem>>, vector<8x128xbf16>,
    %c9_i32 = arith.constant 9 : i32
    %c8_i32_67 = arith.constant 8 : i32
    %167 = arith.muli %c9_i32, %c8_i32_67 : i32
    %168 = tpu.assume_multiple %167, 8 : i32
    %169 = arith.index_cast %168 : i32 to index
    %c0_68 = arith.constant 0 : index
    %170 = vector.load %arg1[%169, %c0_68] : memref<128x128xf32, #tpu.memory_space<vmem>>, vector<8x128xf32>
    %171 = vector.broadcast %3 : vector<1x128xf32> to vector<8x128xf32>
    %172 = arith.addf %170, %171 : vector<8x128xf32>
    %cst_69 = arith.constant 8.000000e-01 : f32
    %173 = vector.broadcast %cst_69 : f32 to vector<8x128xf32>
    %174 = arith.mulf %173, %159 : vector<8x128xf32>
    %cst_70 = arith.constant 2.000000e-01 : f32
    %175 = vector.broadcast %cst_70 : f32 to vector<8x128xf32>
    %176 = arith.mulf %175, %172 : vector<8x128xf32>
    %177 = arith.addf %174, %176 : vector<8x128xf32>
    %cst_71 = arith.constant 0.000000e+00 : f32
    %178 = vector.broadcast %cst_71 : f32 to vector<8x128xf32>
    %179 = arith.maximumf %177, %178 : vector<8x128xf32>
    %180 = arith.index_cast %168 : i32 to index
    %c0_72 = arith.constant 0 : index
    %181 = vector.load %arg7[%180, %c0_72] : memref<128x128xf32, #tpu.memory_space<vmem>>, vector<8x128xf32>
    tpu.vector_store %arg7[%180, %c0_72], %179 {strides = array<i32>} : memref<128x128xf32, #tpu.memory_space<vmem>>, vector<8x128xf32>,
    %182 = arith.truncf %179 : vector<8x128xf32> to vector<8x128xbf16>
    %183 = arith.index_cast %168 : i32 to index
    %c0_73 = arith.constant 0 : index
    %184 = vector.load %arg9[%183, %c0_73] : memref<128x128xbf16, #tpu.memory_space<vmem>>, vector<8x128xbf16>
    tpu.vector_store %arg9[%183, %c0_73], %182 {strides = array<i32>} : memref<128x128xbf16, #tpu.memory_space<vmem>>, vector<8x128xbf16>,
    %c10_i32 = arith.constant 10 : i32
    %c8_i32_74 = arith.constant 8 : i32
    %185 = arith.muli %c10_i32, %c8_i32_74 : i32
    %186 = tpu.assume_multiple %185, 8 : i32
    %187 = arith.index_cast %186 : i32 to index
    %c0_75 = arith.constant 0 : index
    %188 = vector.load %arg1[%187, %c0_75] : memref<128x128xf32, #tpu.memory_space<vmem>>, vector<8x128xf32>
    %189 = vector.broadcast %3 : vector<1x128xf32> to vector<8x128xf32>
    %190 = arith.addf %188, %189 : vector<8x128xf32>
    %cst_76 = arith.constant 8.000000e-01 : f32
    %191 = vector.broadcast %cst_76 : f32 to vector<8x128xf32>
    %192 = arith.mulf %191, %177 : vector<8x128xf32>
    %cst_77 = arith.constant 2.000000e-01 : f32
    %193 = vector.broadcast %cst_77 : f32 to vector<8x128xf32>
    %194 = arith.mulf %193, %190 : vector<8x128xf32>
    %195 = arith.addf %192, %194 : vector<8x128xf32>
    %cst_78 = arith.constant 0.000000e+00 : f32
    %196 = vector.broadcast %cst_78 : f32 to vector<8x128xf32>
    %197 = arith.maximumf %195, %196 : vector<8x128xf32>
    %198 = arith.index_cast %186 : i32 to index
    %c0_79 = arith.constant 0 : index
    %199 = vector.load %arg7[%198, %c0_79] : memref<128x128xf32, #tpu.memory_space<vmem>>, vector<8x128xf32>
    tpu.vector_store %arg7[%198, %c0_79], %197 {strides = array<i32>} : memref<128x128xf32, #tpu.memory_space<vmem>>, vector<8x128xf32>,
    %200 = arith.truncf %197 : vector<8x128xf32> to vector<8x128xbf16>
    %201 = arith.index_cast %186 : i32 to index
    %c0_80 = arith.constant 0 : index
    %202 = vector.load %arg9[%201, %c0_80] : memref<128x128xbf16, #tpu.memory_space<vmem>>, vector<8x128xbf16>
    tpu.vector_store %arg9[%201, %c0_80], %200 {strides = array<i32>} : memref<128x128xbf16, #tpu.memory_space<vmem>>, vector<8x128xbf16>,
    %c11_i32 = arith.constant 11 : i32
    %c8_i32_81 = arith.constant 8 : i32
    %203 = arith.muli %c11_i32, %c8_i32_81 : i32
    %204 = tpu.assume_multiple %203, 8 : i32
    %205 = arith.index_cast %204 : i32 to index
    %c0_82 = arith.constant 0 : index
    %206 = vector.load %arg1[%205, %c0_82] : memref<128x128xf32, #tpu.memory_space<vmem>>, vector<8x128xf32>
    %207 = vector.broadcast %3 : vector<1x128xf32> to vector<8x128xf32>
    %208 = arith.addf %206, %207 : vector<8x128xf32>
    %cst_83 = arith.constant 8.000000e-01 : f32
    %209 = vector.broadcast %cst_83 : f32 to vector<8x128xf32>
    %210 = arith.mulf %209, %195 : vector<8x128xf32>
    %cst_84 = arith.constant 2.000000e-01 : f32
    %211 = vector.broadcast %cst_84 : f32 to vector<8x128xf32>
    %212 = arith.mulf %211, %208 : vector<8x128xf32>
    %213 = arith.addf %210, %212 : vector<8x128xf32>
    %cst_85 = arith.constant 0.000000e+00 : f32
    %214 = vector.broadcast %cst_85 : f32 to vector<8x128xf32>
    %215 = arith.maximumf %213, %214 : vector<8x128xf32>
    %216 = arith.index_cast %204 : i32 to index
    %c0_86 = arith.constant 0 : index
    %217 = vector.load %arg7[%216, %c0_86] : memref<128x128xf32, #tpu.memory_space<vmem>>, vector<8x128xf32>
    tpu.vector_store %arg7[%216, %c0_86], %215 {strides = array<i32>} : memref<128x128xf32, #tpu.memory_space<vmem>>, vector<8x128xf32>,
    %218 = arith.truncf %215 : vector<8x128xf32> to vector<8x128xbf16>
    %219 = arith.index_cast %204 : i32 to index
    %c0_87 = arith.constant 0 : index
    %220 = vector.load %arg9[%219, %c0_87] : memref<128x128xbf16, #tpu.memory_space<vmem>>, vector<8x128xbf16>
    tpu.vector_store %arg9[%219, %c0_87], %218 {strides = array<i32>} : memref<128x128xbf16, #tpu.memory_space<vmem>>, vector<8x128xbf16>,
    %c12_i32 = arith.constant 12 : i32
    %c8_i32_88 = arith.constant 8 : i32
    %221 = arith.muli %c12_i32, %c8_i32_88 : i32
    %222 = tpu.assume_multiple %221, 8 : i32
    %223 = arith.index_cast %222 : i32 to index
    %c0_89 = arith.constant 0 : index
    %224 = vector.load %arg1[%223, %c0_89] : memref<128x128xf32, #tpu.memory_space<vmem>>, vector<8x128xf32>
    %225 = vector.broadcast %3 : vector<1x128xf32> to vector<8x128xf32>
    %226 = arith.addf %224, %225 : vector<8x128xf32>
    %cst_90 = arith.constant 8.000000e-01 : f32
    %227 = vector.broadcast %cst_90 : f32 to vector<8x128xf32>
    %228 = arith.mulf %227, %213 : vector<8x128xf32>
    %cst_91 = arith.constant 2.000000e-01 : f32
    %229 = vector.broadcast %cst_91 : f32 to vector<8x128xf32>
    %230 = arith.mulf %229, %226 : vector<8x128xf32>
    %231 = arith.addf %228, %230 : vector<8x128xf32>
    %cst_92 = arith.constant 0.000000e+00 : f32
    %232 = vector.broadcast %cst_92 : f32 to vector<8x128xf32>
    %233 = arith.maximumf %231, %232 : vector<8x128xf32>
    %234 = arith.index_cast %222 : i32 to index
    %c0_93 = arith.constant 0 : index
    %235 = vector.load %arg7[%234, %c0_93] : memref<128x128xf32, #tpu.memory_space<vmem>>, vector<8x128xf32>
    tpu.vector_store %arg7[%234, %c0_93], %233 {strides = array<i32>} : memref<128x128xf32, #tpu.memory_space<vmem>>, vector<8x128xf32>,
    %236 = arith.truncf %233 : vector<8x128xf32> to vector<8x128xbf16>
    %237 = arith.index_cast %222 : i32 to index
    %c0_94 = arith.constant 0 : index
    %238 = vector.load %arg9[%237, %c0_94] : memref<128x128xbf16, #tpu.memory_space<vmem>>, vector<8x128xbf16>
    tpu.vector_store %arg9[%237, %c0_94], %236 {strides = array<i32>} : memref<128x128xbf16, #tpu.memory_space<vmem>>, vector<8x128xbf16>,
    %c13_i32 = arith.constant 13 : i32
    %c8_i32_95 = arith.constant 8 : i32
    %239 = arith.muli %c13_i32, %c8_i32_95 : i32
    %240 = tpu.assume_multiple %239, 8 : i32
    %241 = arith.index_cast %240 : i32 to index
    %c0_96 = arith.constant 0 : index
    %242 = vector.load %arg1[%241, %c0_96] : memref<128x128xf32, #tpu.memory_space<vmem>>, vector<8x128xf32>
    %243 = vector.broadcast %3 : vector<1x128xf32> to vector<8x128xf32>
    %244 = arith.addf %242, %243 : vector<8x128xf32>
    %cst_97 = arith.constant 8.000000e-01 : f32
    %245 = vector.broadcast %cst_97 : f32 to vector<8x128xf32>
    %246 = arith.mulf %245, %231 : vector<8x128xf32>
    %cst_98 = arith.constant 2.000000e-01 : f32
    %247 = vector.broadcast %cst_98 : f32 to vector<8x128xf32>
    %248 = arith.mulf %247, %244 : vector<8x128xf32>
    %249 = arith.addf %246, %248 : vector<8x128xf32>
    %cst_99 = arith.constant 0.000000e+00 : f32
    %250 = vector.broadcast %cst_99 : f32 to vector<8x128xf32>
    %251 = arith.maximumf %249, %250 : vector<8x128xf32>
    %252 = arith.index_cast %240 : i32 to index
    %c0_100 = arith.constant 0 : index
    %253 = vector.load %arg7[%252, %c0_100] : memref<128x128xf32, #tpu.memory_space<vmem>>, vector<8x128xf32>
    tpu.vector_store %arg7[%252, %c0_100], %251 {strides = array<i32>} : memref<128x128xf32, #tpu.memory_space<vmem>>, vector<8x128xf32>,
    %254 = arith.truncf %251 : vector<8x128xf32> to vector<8x128xbf16>
    %255 = arith.index_cast %240 : i32 to index
    %c0_101 = arith.constant 0 : index
    %256 = vector.load %arg9[%255, %c0_101] : memref<128x128xbf16, #tpu.memory_space<vmem>>, vector<8x128xbf16>
    tpu.vector_store %arg9[%255, %c0_101], %254 {strides = array<i32>} : memref<128x128xbf16, #tpu.memory_space<vmem>>, vector<8x128xbf16>,
    %c14_i32 = arith.constant 14 : i32
    %c8_i32_102 = arith.constant 8 : i32
    %257 = arith.muli %c14_i32, %c8_i32_102 : i32
    %258 = tpu.assume_multiple %257, 8 : i32
    %259 = arith.index_cast %258 : i32 to index
    %c0_103 = arith.constant 0 : index
    %260 = vector.load %arg1[%259, %c0_103] : memref<128x128xf32, #tpu.memory_space<vmem>>, vector<8x128xf32>
    %261 = vector.broadcast %3 : vector<1x128xf32> to vector<8x128xf32>
    %262 = arith.addf %260, %261 : vector<8x128xf32>
    %cst_104 = arith.constant 8.000000e-01 : f32
    %263 = vector.broadcast %cst_104 : f32 to vector<8x128xf32>
    %264 = arith.mulf %263, %249 : vector<8x128xf32>
    %cst_105 = arith.constant 2.000000e-01 : f32
    %265 = vector.broadcast %cst_105 : f32 to vector<8x128xf32>
    %266 = arith.mulf %265, %262 : vector<8x128xf32>
    %267 = arith.addf %264, %266 : vector<8x128xf32>
    %cst_106 = arith.constant 0.000000e+00 : f32
    %268 = vector.broadcast %cst_106 : f32 to vector<8x128xf32>
    %269 = arith.maximumf %267, %268 : vector<8x128xf32>
    %270 = arith.index_cast %258 : i32 to index
    %c0_107 = arith.constant 0 : index
    %271 = vector.load %arg7[%270, %c0_107] : memref<128x128xf32, #tpu.memory_space<vmem>>, vector<8x128xf32>
    tpu.vector_store %arg7[%270, %c0_107], %269 {strides = array<i32>} : memref<128x128xf32, #tpu.memory_space<vmem>>, vector<8x128xf32>,
    %272 = arith.truncf %269 : vector<8x128xf32> to vector<8x128xbf16>
    %273 = arith.index_cast %258 : i32 to index
    %c0_108 = arith.constant 0 : index
    %274 = vector.load %arg9[%273, %c0_108] : memref<128x128xbf16, #tpu.memory_space<vmem>>, vector<8x128xbf16>
    tpu.vector_store %arg9[%273, %c0_108], %272 {strides = array<i32>} : memref<128x128xbf16, #tpu.memory_space<vmem>>, vector<8x128xbf16>,
    %c15_i32 = arith.constant 15 : i32
    %c8_i32_109 = arith.constant 8 : i32
    %275 = arith.muli %c15_i32, %c8_i32_109 : i32
    %276 = tpu.assume_multiple %275, 8 : i32
    %277 = arith.index_cast %276 : i32 to index
    %c0_110 = arith.constant 0 : index
    %278 = vector.load %arg1[%277, %c0_110] : memref<128x128xf32, #tpu.memory_space<vmem>>, vector<8x128xf32>
    %279 = vector.broadcast %3 : vector<1x128xf32> to vector<8x128xf32>
    %280 = arith.addf %278, %279 : vector<8x128xf32>
    %cst_111 = arith.constant 8.000000e-01 : f32
    %281 = vector.broadcast %cst_111 : f32 to vector<8x128xf32>
    %282 = arith.mulf %281, %267 : vector<8x128xf32>
    %cst_112 = arith.constant 2.000000e-01 : f32
    %283 = vector.broadcast %cst_112 : f32 to vector<8x128xf32>
    %284 = arith.mulf %283, %280 : vector<8x128xf32>
    %285 = arith.addf %282, %284 : vector<8x128xf32>
    %cst_113 = arith.constant 0.000000e+00 : f32
    %286 = vector.broadcast %cst_113 : f32 to vector<8x128xf32>
    %287 = arith.maximumf %285, %286 : vector<8x128xf32>
    %288 = arith.index_cast %276 : i32 to index
    %c0_114 = arith.constant 0 : index
    %289 = vector.load %arg7[%288, %c0_114] : memref<128x128xf32, #tpu.memory_space<vmem>>, vector<8x128xf32>
    tpu.vector_store %arg7[%288, %c0_114], %287 {strides = array<i32>} : memref<128x128xf32, #tpu.memory_space<vmem>>, vector<8x128xf32>,
    %290 = arith.truncf %287 : vector<8x128xf32> to vector<8x128xbf16>
    %291 = arith.index_cast %276 : i32 to index
    %c0_115 = arith.constant 0 : index
    %292 = vector.load %arg9[%291, %c0_115] : memref<128x128xbf16, #tpu.memory_space<vmem>>, vector<8x128xbf16>
    tpu.vector_store %arg9[%291, %c0_115], %290 {strides = array<i32>} : memref<128x128xbf16, #tpu.memory_space<vmem>>, vector<8x128xbf16>,
    %c16_i32 = arith.constant 16 : i32
    %c0_116 = arith.constant 0 : index
    %c0_117 = arith.constant 0 : index
    %293 = vector.load %arg8[%c0_116, %c0_117] : memref<8x128xf32, #tpu.memory_space<vmem>>, vector<8x128xf32>
    tpu.vector_store %arg8[%c0_116, %c0_117], %285 {strides = array<i32>} : memref<8x128xf32, #tpu.memory_space<vmem>>, vector<8x128xf32>,
    %c0_118 = arith.constant 0 : index
    %c0_119 = arith.constant 0 : index
    %294 = vector.load %arg9[%c0_118, %c0_119] : memref<128x128xbf16, #tpu.memory_space<vmem>>, vector<128x128xbf16>
    %c0_120 = arith.constant 0 : index
    %c0_121 = arith.constant 0 : index
    %295 = vector.load %arg4[%c0_120, %c0_121] : memref<128x256xbf16, #tpu.memory_space<vmem>>, vector<128x256xbf16>
    %cst_122 = arith.constant dense<0.000000e+00> : vector<128x256xf32>
    %296 = tpu.matmul %294, %295, %cst_122 {dimension_numbers = #tpu.dot_dimension_numbers<[1], [0], [0], [1], [0, 0, 1, 1], [], []>} : vector<128x128xbf16>, vector<128x256xbf16>, vector<128x256xf32> -> vector<128x256xf32>
    %297 = vector.extract_strided_slice %296 {offsets = [0, 0], sizes = [128, 128], strides = [1, 1]} : vector<128x256xf32> to vector<128x128xf32>
    %c0_123 = arith.constant 0 : index
    %c0_124 = arith.constant 0 : index
    %298 = vector.load %arg5[%c0_123, %c0_124] : memref<128x128xf32, #tpu.memory_space<vmem>>, vector<128x128xf32>
    tpu.vector_store %arg5[%c0_123, %c0_124], %297 {strides = array<i32>} : memref<128x128xf32, #tpu.memory_space<vmem>>, vector<128x128xf32>,
    %299 = vector.extract_strided_slice %296 {offsets = [0, 128], sizes = [128, 128], strides = [1, 1]} : vector<128x256xf32> to vector<128x128xf32>
    %c0_125 = arith.constant 0 : index
    %c0_126 = arith.constant 0 : index
    %300 = vector.load %arg6[%c0_125, %c0_126] : memref<128x128xf32, #tpu.memory_space<vmem>>, vector<128x128xf32>
    tpu.vector_store %arg6[%c0_125, %c0_126], %299 {strides = array<i32>} : memref<128x128xf32, #tpu.memory_space<vmem>>, vector<128x128xf32>,
    return
  }
  func.func @transform_0(%arg0: i32) -> (i32, i32) {
    %c0_i32 = arith.constant 0 : i32
    %c0_i32_0 = arith.constant 0 : i32
    return %arg0, %c0_i32 : i32, i32
  }
  func.func @transform_1(%arg0: i32) -> (i32, i32) {
    %c0_i32 = arith.constant 0 : i32
    %c0_i32_0 = arith.constant 0 : i32
    %c0_i32_1 = arith.constant 0 : i32
    return %c0_i32, %c0_i32_0 : i32, i32
  }
  func.func @transform_2(%arg0: i32) -> (i32, i32) {
    %c0_i32 = arith.constant 0 : i32
    %c0_i32_0 = arith.constant 0 : i32
    %c0_i32_1 = arith.constant 0 : i32
    return %c0_i32, %c0_i32_0 : i32, i32
  }
  func.func @transform_3(%arg0: i32) -> (i32, i32) {
    %c0_i32 = arith.constant 0 : i32
    %c0_i32_0 = arith.constant 0 : i32
    %c0_i32_1 = arith.constant 0 : i32
    return %c0_i32, %c0_i32_0 : i32, i32
  }
  func.func @transform_4(%arg0: i32) -> (i32, i32) {
    %c0_i32 = arith.constant 0 : i32
    %c0_i32_0 = arith.constant 0 : i32
    return %arg0, %c0_i32 : i32, i32
  }
  func.func @transform_5(%arg0: i32) -> (i32, i32) {
    %c0_i32 = arith.constant 0 : i32
    %c0_i32_0 = arith.constant 0 : i32
    return %arg0, %c0_i32 : i32, i32
  }
  func.func @transform_6(%arg0: i32) -> (i32, i32) {
    %c0_i32 = arith.constant 0 : i32
    %c0_i32_0 = arith.constant 0 : i32
    return %arg0, %c0_i32 : i32, i32
  }
  func.func @transform_7(%arg0: i32) -> (i32, i32) {
    %c0_i32 = arith.constant 0 : i32
    %c0_i32_0 = arith.constant 0 : i32
    %c0_i32_1 = arith.constant 0 : i32
    return %c0_i32, %c0_i32_0 : i32, i32
  }
}

</mosaic_0001>

<bundles_post_ra>
// kernel: tpu_custom_call.1
= control target key start
LH: loop header
LB: loop body
LE: loop exit
PB: predicated region body
PF: predicated region fallthrough
CT: control target
= control target key end

     0   :  { %s1986_s0 = inlined_call_operand.hbm [shape: f32[512,128], index: 0, kind: input, shape index: {}]   ;;  %s1987_s1 = inlined_call_operand.hbm [shape: f32[8,128], index: 1, kind: input, shape index: {}]   ;;  %s1988_s2 = inlined_call_operand.vmem [shape: f32[1,128], index: 2, kind: input, shape index: {}]   ;;  %s1989_s3 = inlined_call_operand.hbm [shape: bf16[128,256], index: 3, kind: input, shape index: {}]   ;;  %s1990_s4 = inlined_call_operand.hbm [shape: f32[512,128], index: 4, kind: output, shape index: {0}]   ;;  %s1991_s5 = inlined_call_operand.hbm [shape: f32[512,128], index: 5, kind: output, shape index: {1}]   ;;  %s1992_s6 = inlined_call_operand.hbm [shape: f32[512,128], index: 6, kind: output, shape index: {2}]   ;;  %s1993_s7 = inlined_call_operand.hbm [shape: f32[8,128], index: 7, kind: output, shape index: {3}]  }
   0x1   :  { %2003 = sst [smem:[#allocation23_spill]] %s1987_s1 }
   0x2   :  { %13 = vsyncpa [#allocation4], 0 }
   0x3   :  { %15 = vsyncpa [#allocation4 + $0x1], 0 }
   0x4   :  { %16 = vsyncpa [#allocation7], 0 }
   0x5   :  { %17 = vsyncpa [#allocation5], 0 }
   0x6   :  { %19 = vsyncpa [#allocation5 + $0x1], 0 }
   0x7   :  { %20 = vsyncpa [#allocation11], 0 }
   0x8   :  { %22 = vsyncpa [#allocation11 + $0x1], 0 }
   0x9   :  { %23 = vsyncpa [#allocation14], 0  ;;  %s1596_s24 = smov 0   ;;  %s1598_s25 = smov 0  }
   0xa   :  { %s1600_s26 = smov 0   ;;  %s1602_s27 = smov 0  }
   0xb LB: > { %2004 = sst [smem:[#allocation20_spill]] %s1538_s26  ;;  %s1617_s28 = sadd.s32 4294967295, %s1542_s27   ;;  %s1542_s27 = sphi %s1602_s27, %s2029_s27   ;;  %s1538_s26 = sphi %s1600_s26, %s2031_s26   ;;  %s1534_s25 = sphi %s1598_s25, %s2033_s25   ;;  %s1530_s24 = sphi %s1596_s24, %s2032_s24  }
   0xc   : > { %s1998_s29 = sadd.s32 4294967294, %s1542_s27   ;;  %s1621_s30 = sadd.s32 1, %s1542_s27  }
   0xd   : > { %2005 = sst [smem:[#allocation21_spill]] %s1621_s30  ;;  %s36_s8 = sadd.s32 1, %s1538_s26 }
   0xe   : > { %s33_s9 = ssub.s32 %s1542_s27, %s1621_s30  ;;  %p43_p0 = scmp.ne.s32.totalorder %s1538_s26, %s1534_s25 }
   0xf   : > { %p34_p1 = scmp.eq.s32.totalorder %s33_s9, 0  ;;  %p44_p2 = scmp.eq.s32.totalorder %s1542_s27, 0 }
  0x10   : > { %p49_p3 = scmp.ne.s32.totalorder %s1534_s25, %s1530_s24  ;;  %p1994_p4 = scmp.eq.s32.totalorder %s1617_s28, 0 }
  0x11   : > { %s1633_s10 = scalar_select %p34_p1, %s1538_s26, %s36_s8  }
  0x12   : > { %p1635_p5 = por %p44_p2, %p43_p0  ;;  %p1641_p6 = por %p1994_p4, %p49_p3 }
  0x13   : > { %2006 = sst [smem:[#allocation22_spill]] %s1633_s10  ;;  %p1995_p7 = scmp.eq.s32.totalorder %s1617_s28, 3 }
  0x14   : > { %s2008_s12 = scalar_select %p1641_p6, 1, 0 }
  0x15   : > { %p142_p8 = scmp.eq.s32.totalorder %s1998_s29, 3  ;;  %p1086_p9 = scmp.ge.s32.totalorder %s1542_s27, 1 }
  0x16   : > { %p222_p10 = scmp.lt.s32.totalorder %s1542_s27, 5  ;;  %p1652_p11 = por %p1995_p7, %p43_p0 }
  0x17   : > { %p1656_p12 = por %p142_p8, %p49_p3  ;;  %s1544_s16 = smov [#allocation6]  }
  0x18   : > { %s2009_s13 = scalar_select %p1652_p11, 1, 0 }
  0x19   : > { %s2010_s14 = scalar_select %p1656_p12, 1, 0 }
  0x1a   : > { %p1660_p13 = pnand %p1086_p9, %p222_p10  ;;  %s235_s17 = sshll.u32 %s1544_s16, 4  ;;  %s236_s17 = int_to_ptr.vmem [resolvable:$true] %s235_s17 }
  0x1b   : > { %p1232_p4 = scmp.lt.s32.totalorder %s1542_s27, 4  ;;  %p2012_p0 = scmp.eq.s32.totalorder %s1617_s28, 0 }
  0x1c   : > { %s2011_s15 = scalar_select %p1660_p13, 1, 0 }
  0x1d   : > { %p1209_p2 = pneg %p1660_p13  ;;  %p1676_p3 = pnand %p1232_p4, %p1635_p5 }
  0x1e   : > { %s1545_s20 = smov [#allocation8]   ;;  %s1321_s22 = scalar_lea.vmem %s236_s17, 128 }
  0x1f   : > { %p1670_p7 = pnand %p1209_p2, %p2012_p0  ;;  %s248_s21 = sshll.u32 %s1545_s20, 4  ;;  %s249_s21 = int_to_ptr.vmem [resolvable:$true] %s248_s21 }
  0x20   : > { %p1322_p9 = scmp.ne.s32.totalorder %s236_s17, %s1321_s22  ;;  %p1329_p0 = scmp.lt.s32.totalorder %s236_s17, %s236_s17 }
  0x21   : > { %p1312_p8 = pneg %p1670_p7  ;;  %p1330_p1 = scmp.lt.s32.totalorder %s1321_s22, %s1321_s22 }
  0x23   : > { %p1324_p10 = pnand %p1322_p9, %p1312_p8  ;;  %p1331_p12 = por %p1330_p1, %p1329_p0 }
  0x25   : > { %p1325_p2 = pneg %p1324_p10 }
  0x27   : > { %p1332_p11 = pnand %p1331_p12, %p1325_p2 }
  0x29   : > { %1335 = shalt.err (!%p1332_p11)
}
  0x2a   : > { %s2015_s1 = sld [smem:[#allocation23_spill]]  ;;  %s262_s9 = sand.u32 1, %s1538_s26  }
  0x2b   : > { %s1347_s11 = scalar_lea.vmem %s249_s21, 2048  ;;  %p1355_p10 = scmp.lt.s32.totalorder %s249_s21, %s249_s21 }
  0x2c   : > { %p1348_p4 = scmp.ne.s32.totalorder %s249_s21, %s1347_s11  ;;  %p1356_p6 = scmp.lt.s32.totalorder %s1347_s11, %s1347_s11 }
  0x2e   : > { %p1350_p5 = pnand %p1348_p4, %p1312_p8  ;;  %p1357_p1 = por %p1356_p6, %p1355_p10 }
  0x30   : > { %1212 = dma.hbm_to_vmem [thread:$0]  (!%p1670_p7), %s2015_s1, 128, %s236_s17, [#allocation7]  }
  0x31   : > { %p1351_p9 = pneg %p1350_p5 }
  0x33   : > { %p1358_p12 = pnand %p1357_p1, %p1351_p9 }
  0x35   : > { %1361 = shalt.err (!%p1358_p12)
}
  0x36   : > { %s1546_s16 = smov 128   ;;  %s1547_s20 = smov 8  }
  0x37   : > { %1215 = dma.hbm_to_vmem [thread:$0]  (!%p1670_p7), %s1989_s3, 2048, %s249_s21, [#allocation7], %s1546_s16, %s1546_s16, %s1547_s20  }
  0x38   : > { %s1090_s23 = sshll.u32 %s262_s9, 7  ;;  %s1169_s8 = sshll.u32 %s1542_s27, 11 }
  0x39   : > { %s1706_s1 = scalar_lea.hbm %s1986_s0, %s1169_s8  ;;  %s266_s10 = scalar_lea.vmem [#allocation3], %s1090_s23 }
  0x3a   : > { %s273_s26 = sshll.u32 %s266_s10, 4  ;;  %s1710_s18 = scalar_lea.sflag [#allocation4], %s262_s9  ;;  %s1708_s26 = int_to_ptr.vmem [resolvable:$true] %s273_s26 }
  0x3b   : > { %s1362_s30 = scalar_lea.hbm %s1706_s1, 2048  ;;  %p1364_p7 = pneg %p1676_p3 }
  0x3c   : > { %p1363_p6 = scmp.ne.s32.totalorder %s1706_s1, %s1362_s30  ;;  %s1367_s29 = scalar_lea.hbm %s1986_s0, 8192 }
  0x3d   : > { %p1368_p2 = scmp.lt.s32.totalorder %s1706_s1, %s1986_s0  ;;  %p1369_p0 = scmp.lt.s32.totalorder %s1367_s29, %s1362_s30 }
  0x3e   : > { %p1365_p11 = pnand %p1364_p7, %p1363_p6 }
  0x3f   : > { %p1370_p4 = por %p1369_p0, %p1368_p2 }
  0x40   : > { %p1366_p8 = pneg %p1365_p11 }
  0x42   : > { %p1371_p5 = pnand %p1370_p4, %p1366_p8 }
  0x44   : > { %1374 = shalt.err (!%p1371_p5)
}
  0x45   : > { %s1375_s10 = scalar_lea.vmem %s1708_s26, 2048  ;;  %s1548_s9 = smov [#allocation3]  }
  0x46   : > { %p1376_p9 = scmp.ne.s32.totalorder %s1708_s26, %s1375_s10  ;;  %s1380_s23 = sshll.u32 %s1548_s9, 4  ;;  %s1381_s23 = int_to_ptr.vmem [resolvable:$false] %s1380_s23 }
  0x47   : > { %s1382_s11 = scalar_lea.vmem %s1381_s23, 4096  ;;  %p1383_p12 = scmp.lt.s32.totalorder %s1708_s26, %s1381_s23 }
  0x48   : > { %p1378_p10 = pnand %p1376_p9, %p1364_p7  ;;  %p1384_p6 = scmp.lt.s32.totalorder %s1382_s11, %s1375_s10 }
  0x4a   : > { %p1379_p1 = pneg %p1378_p10  ;;  %p1385_p11 = por %p1384_p6, %p1383_p12 }
  0x4c   : > { %p1386_p13 = pnand %p1385_p11, %p1379_p1 }
  0x4e   : > { %1389 = shalt.err (!%p1386_p13)
}
  0x4f   : > { %1219 = dma.hbm_to_vmem [thread:$0]  (!%p1676_p3), %s1706_s1, 2048, %s1708_s26, %s1710_s18, %s1546_s16, %s1546_s16, %s1547_s20  }
  0x50   : > { %p2016_p7 = scmp.ne.s32.totalorder %s2011_s15, 0 }
  0x51   : > { %s1737_s30 = sand.u32 (!%p2016_p7), 1, %s1534_s25   ;;  %p2017_p13 = scmp.ne.s32.totalorder (!%p2016_p7), %s2008_s12, 0 }
  0x52   : > { %285 = sbr.rel (%p2016_p7) target bundleno = 445 (0x1bd), region = 36  ;;  %s1094_s21 = sshll.u32 (!%p2016_p7), %s1737_s30, 7 }
  0x53   : > { %s288_s17 = scalar_lea.sflag (!%p2016_p7), [#allocation4], %s1737_s30  ;;  %s1741_s29 = scalar_lea.vmem (!%p2016_p7), [#allocation3], %s1094_s21 }
  0x57   : > { %1509 = dma.done.wait (%p2017_p13), %s288_s17, 2048  }
  0x58   : > { %1511 = vsyncadd (%p2017_p13), %s288_s17, 4294965248  ;;  %p2018_p3 = scmp.eq.s32.totalorder %s1617_s28, 0 }
  0x5a   : > { %1513 = dma.done.wait (%p2018_p3), [#allocation7], 2176   ;;  %p2019_p8 = pmov %p2018_p3 }
  0x5b   : > { %s1751_s1 = scalar_lea.vmem [#allocation9], %s1094_s21  ;;  %s1753_s26 = scalar_lea.vmem [#allocation10], %s1094_s21 }
  0x5c   : > { %1515 = vsyncadd (%p2019_p8), [#allocation7], 4294965120  ;;  %s1755_s15 = scalar_lea.vmem [#allocation12], %s1094_s21  ;;  %p2020_p2 = scmp.ne.s32.totalorder %s1617_s28, 0 }
  0x5e   : > { %348 = sbr.rel (%p2020_p2) target bundleno = 101 (0x65), region = 52 }
  0x63   : > { %v349_v0 = vld [vmem:[#allocation6] sm:$0xff] }
  0x64   : > { %350 = vst [vmem:[#allocation13] sm:$0xff] %v349_v0 }
  0x65 PF: > { %v1278_v1 = vld [vmem:[#allocation8 + $0x74] ss:$8 sps:$4 sm:$0xff]   ;;  %v1280_v2 = vld [vmem:[#allocation8 + $0x70] ss:$8 sps:$4 sm:$0xff]   ;;  %v1549_v3 = vmov 0   ;;  %v1102_v13 = vld [vmem:[%s1741_s29 + $0x8] sm:$0xff] }
  0x66   : > { %741 = vmatprep.mubr.bf16.mxu0 %v1549_v3  ;;  %781 = vmatprep.mubr.bf16.mxu1 %v1549_v3  ;;  %v1281_v4 = vld [vmem:[#allocation8 + $0x64] ss:$8 sps:$4 sm:$0xff]   ;;  %v1283_v5 = vld [vmem:[#allocation8 + $0x60] ss:$8 sps:$4 sm:$0xff]   ;;  %v1284_v6 = vld [vmem:[#allocation8 + $0x54] ss:$8 sps:$4 sm:$0xff]  }
  0x67   : > { %709 = vmatprep.subr.bf16.mxu0 %v1278_v1  ;;  %1173 = vmatprep.subr.bf16.mxu1 %v1278_v1  ;;  %v1286_v7 = vld [vmem:[#allocation8 + $0x50] ss:$8 sps:$4 sm:$0xff]   ;;  %v1287_v8 = vld [vmem:[#allocation8 + $0x44] ss:$8 sps:$4 sm:$0xff]   ;;  %v1289_v9 = vld [vmem:[#allocation8 + $0x40] ss:$8 sps:$4 sm:$0xff]  }
  0x68   : > { %710 = vmatpush1.bf16.msra.mxu0 %v1280_v2  ;;  %1181 = vmatpush1.bf16.msra.mxu1 %v1280_v2  ;;  %v1764_v10 = vld [vmem:[%s1988_s2] ss:$0 sm:$0xff]  ;;  %v1290_v14 = vld [vmem:[#allocation8 + $0x34] ss:$8 sps:$4 sm:$0xff]   ;;  %v1104_v18 = vld [vmem:[%s1741_s29 + $0x10] sm:$0xff]  ;;  %s1550_s16 = smov [#allocation13]  }
  0x69   : > { %711 = vmatprep.subr.bf16.mxu0 %v1281_v4  ;;  %1174 = vmatprep.subr.bf16.mxu1 %v1281_v4  ;;  %v353_v12 = vld [vmem:[%s1741_s29] sm:$0xff]  ;;  %v370_v17 = vadd.f32 %v1102_v13, %v1764_v10  ;;  %v1293_v21 = vld [vmem:[#allocation8 + $0x24] ss:$8 sps:$4 sm:$0xff]   ;;  %v382_v24 = vadd.f32 %v1104_v18, %v1764_v10  ;;  %v1106_v25 = vld [vmem:[%s1741_s29 + $0x18] sm:$0xff]  ;;  %s924_s20 = sshll.u32 %s1550_s16, 4  ;;  %p2021_p4 = scmp.eq.s32.totalorder %s1617_s28, 3  ;;  %s925_s20 = int_to_ptr.vmem [resolvable:$true] %s924_s20 }
  0x6a   : > { %v360_v15 = vadd.f32 %v1764_v10, %v353_v12  ;;  %v1292_v20 = vld [vmem:[#allocation8 + $0x30] ss:$8 sps:$4 sm:$0xff]   ;;  %v1295_v28 = vld [vmem:[#allocation8 + $0x20] ss:$8 sps:$4 sm:$0xff]   ;;  %v1296_v29 = vld [vmem:[#allocation8 + $0x14] ss:$8 sps:$4 sm:$0xff]   ;;  %v394_v33 = vadd.f32 %v1106_v25, %v1764_v10  ;;  %p1397_p10 = scmp.lt.s32.totalorder %s925_s20, %s925_s20 }
  0x6b   : > { %v352_v11 = vld [vmem:[#allocation13] sm:$0xff]  ;;  %v372_v23 = vmul.f32 0.2, %v370_v17  ;;  %v384_v32 = vmul.f32 0.2, %v382_v24  ;;  %v1108_v34 = vld [vmem:[%s1741_s29 + $0x20] sm:$0xff] }
  0x6c   : > { %712 = vmatpush1.bf16.msra.mxu0 %v1283_v5  ;;  %1182 = vmatpush1.bf16.msra.mxu1 %v1283_v5  ;;  %v361_v16 = vmul.f32 0.8, %v352_v11  ;;  %v362_v19 = vmul.f32 0.2, %v360_v15  ;;  %v1298_v37 = vld [vmem:[#allocation8 + $0x10] ss:$8 sps:$4 sm:$0xff]   ;;  %v406_v42 = vadd.f32 %v1108_v34, %v1764_v10 }
  0x6d   : > { %713 = vmatprep.subr.bf16.mxu0 %v1284_v6  ;;  %1175 = vmatprep.subr.bf16.mxu1 %v1284_v6  ;;  %v1299_v38 = vld [vmem:[#allocation8 + $0x4] ss:$8 sps:$4 sm:$0xff]   ;;  %v396_v41 = vmul.f32 0.2, %v394_v33  ;;  %v1301_v46 = vld [vmem:[#allocation8] ss:$8 sps:$4 sm:$0xff]  }
  0x6e   : > { %v363_v22 = vadd.f32 %v362_v19, %v361_v16  ;;  %v1110_v43 = vld [vmem:[%s1741_s29 + $0x28] sm:$0xff]  ;;  %v408_v48 = vmul.f32 0.2, %v406_v42  ;;  %v1112_v51 = vld [vmem:[%s1741_s29 + $0x30] sm:$0xff]  ;;  %v1114_v59 = vld [vmem:[%s1741_s29 + $0x38] sm:$0xff]  ;;  %s1390_s18 = scalar_lea.vmem %s925_s20, 128 }
  0x6f   : > { %v418_v49 = vadd.f32 %v1110_v43, %v1764_v10  ;;  %v430_v56 = vadd.f32 %v1112_v51, %v1764_v10  ;;  %v442_v0 = vadd.f32 %v1114_v59, %v1764_v10  ;;  %v1116_v2 = vld [vmem:[%s1741_s29 + $0x40] sm:$0xff]  ;;  %v1118_v11 = vld [vmem:[%s1741_s29 + $0x48] sm:$0xff]  ;;  %v1120_v19 = vld [vmem:[%s1741_s29 + $0x50] sm:$0xff]  ;;  %p1391_p0 = scmp.ne.s32.totalorder %s925_s20, %s1390_s18  ;;  %p1398_p1 = scmp.lt.s32.totalorder %s1390_s18, %s1390_s18 }
  0x70   : > { %714 = vmatpush1.bf16.msra.mxu0 %v1286_v7  ;;  %1183 = vmatpush1.bf16.msra.mxu1 %v1286_v7  ;;  %v364_v26 = vmax.f32 %v363_v22, 0.0  ;;  %v371_v27 = vmul.f32 0.8, %v363_v22  ;;  %v466_v17 = vadd.f32 %v1118_v11, %v1764_v10  ;;  %v478_v24 = vadd.f32 %v1120_v19, %v1764_v10  ;;  %v1124_v34 = vld [vmem:[%s1741_s29 + $0x60] sm:$0xff] }
  0x71   : > { %715 = vmatprep.subr.bf16.mxu0 %v1287_v8  ;;  %1176 = vmatprep.subr.bf16.mxu1 %v1287_v8  ;;  %v420_v55 = vmul.f32 0.2, %v418_v49  ;;  %v432_v63 = vmul.f32 0.2, %v430_v56  ;;  %v444_v7 = vmul.f32 0.2, %v442_v0  ;;  %v454_v8 = vadd.f32 %v1116_v2, %v1764_v10  ;;  %p1392_p5 = pnand %p1391_p0, %p2021_p4  ;;  %p1399_p12 = por %p1398_p1, %p1397_p10 }
  0x72   : > { %365 = vst [vmem:[%s1755_s15] sm:$0xff] %v364_v26  ;;  %v366_v30 = vpack.c.bf16 %v364_v26, %v364_v26  ;;  %v373_v31 = vadd.f32 %v372_v23, %v371_v27  ;;  %v468_v23 = vmul.f32 0.2, %v466_v17  ;;  %v1122_v26 = vld [vmem:[%s1741_s29 + $0x58] sm:$0xff]  ;;  %v1128_v49 = vld [vmem:[%s1741_s29 + $0x70] sm:$0xff] }
  0x73   : > { %v456_v16 = vmul.f32 0.2, %v454_v8  ;;  %v490_v33 = vadd.f32 %v1122_v26, %v1764_v10  ;;  %p1393_p9 = pneg %p1392_p5 }
  0x74   : > { %716 = vmatpush1.bf16.msra.mxu0 %v1289_v9  ;;  %1184 = vmatpush1.bf16.msra.mxu1 %v1289_v9  ;;  %367 = vst [vmem:[#allocation2] sm:$0xf] %v366_v30  ;;  %v374_v35 = vmax.f32 %v373_v31, 0.0  ;;  %v383_v36 = vmul.f32 0.8, %v373_v31 }
  0x75   : > { %717 = vmatprep.subr.bf16.mxu0 %v1290_v14  ;;  %1177 = vmatprep.subr.bf16.mxu1 %v1290_v14  ;;  %p1400_p6 = pnand %p1399_p12, %p1393_p9 }
  0x76   : > { %1103 = vst [vmem:[%s1755_s15 + $0x8] sm:$0xff] %v374_v35  ;;  %v377_v39 = vpack.c.bf16 %v374_v35, %v374_v35  ;;  %v385_v40 = vadd.f32 %v384_v32, %v383_v36  ;;  %v480_v32 = vmul.f32 0.2, %v478_v24 }
  0x78   : > { %718 = vmatpush1.bf16.msra.mxu0 %v1292_v20  ;;  %1185 = vmatpush1.bf16.msra.mxu1 %v1292_v20  ;;  %379 = vst [vmem:[#allocation2 + $0x4] sm:$0xf] %v377_v39  ;;  %v395_v44 = vmul.f32 0.8, %v385_v40  ;;  %v386_v45 = vmax.f32 %v385_v40, 0.0  ;;  %v502_v40 = vadd.f32 %v1124_v34, %v1764_v10 }
  0x79   : > { %719 = vmatprep.subr.bf16.mxu0 %v1293_v21  ;;  %1178 = vmatprep.subr.bf16.mxu1 %v1293_v21  ;;  %v492_v39 = vmul.f32 0.2, %v490_v33 }
  0x7a   : > { %v397_v47 = vadd.f32 %v396_v41, %v395_v44  ;;  %1105 = vst [vmem:[%s1755_s15 + $0x10] sm:$0xff] %v386_v45  ;;  %v389_v50 = vpack.c.bf16 %v386_v45, %v386_v45  ;;  %v1126_v41 = vld [vmem:[%s1741_s29 + $0x68] sm:$0xff] }
  0x7c   : > { %720 = vmatpush1.bf16.msra.mxu0 %v1295_v28  ;;  %1186 = vmatpush1.bf16.msra.mxu1 %v1295_v28  ;;  %v407_v52 = vmul.f32 0.8, %v397_v47  ;;  %391 = vst [vmem:[#allocation2 + $0x8] sm:$0xf] %v389_v50  ;;  %v398_v53 = vmax.f32 %v397_v47, 0.0 }
  0x7d   : > { %721 = vmatprep.subr.bf16.mxu0 %v1296_v29  ;;  %1179 = vmatprep.subr.bf16.mxu1 %v1296_v29  ;;  %v504_v47 = vmul.f32 0.2, %v502_v40 }
  0x7e   : > { %v409_v54 = vadd.f32 %v408_v48, %v407_v52  ;;  %1107 = vst [vmem:[%s1755_s15 + $0x18] sm:$0xff] %v398_v53  ;;  %v401_v57 = vpack.c.bf16 %v398_v53, %v398_v53  ;;  %v514_v48 = vadd.f32 %v1126_v41, %v1764_v10 }
  0x7f   : > { %v1302_v58 = vld [vmem:[#allocation2] sm:$0xff]  }
  0x80   : > { %722 = vmatpush1.bf16.msra.mxu0 %v1298_v37  ;;  %1187 = vmatpush1.bf16.msra.mxu1 %v1298_v37  ;;  %v419_v60 = vmul.f32 0.8, %v409_v54  ;;  %403 = vst [vmem:[#allocation2 + $0xc] sm:$0xf] %v401_v57  ;;  %v410_v61 = vmax.f32 %v409_v54, 0.0  ;;  %v1130_v57 = vld [vmem:[%s1741_s29 + $0x78] sm:$0xff] }
  0x81   : > { %723 = vmatprep.subr.bf16.mxu0 %v1299_v38  ;;  %1180 = vmatprep.subr.bf16.mxu1 %v1299_v38  ;;  %v516_v54 = vmul.f32 0.2, %v514_v48 }
  0x82   : > { %v421_v62 = vadd.f32 %v420_v55, %v419_v60  ;;  %1109 = vst [vmem:[%s1755_s15 + $0x20] sm:$0xff] %v410_v61  ;;  %v413_v1 = vpack.c.bf16 %v410_v61, %v410_v61  ;;  %v526_v55 = vadd.f32 %v1128_v49, %v1764_v10 }
  0x84   : > { %724 = vmatpush1.bf16.msra.mxu0 %v1301_v46  ;;  %1188 = vmatpush1.bf16.msra.mxu1 %v1301_v46  ;;  %v431_v4 = vmul.f32 0.8, %v421_v62  ;;  %415 = vst [vmem:[#allocation2 + $0x10] sm:$0xf] %v413_v1  ;;  %v422_v5 = vmax.f32 %v421_v62, 0.0 }
  0x85   : > { %v528_v62 = vmul.f32 0.2, %v526_v55 }
  0x86   : > { %v433_v6 = vadd.f32 %v432_v63, %v431_v4  ;;  %1111 = vst [vmem:[%s1755_s15 + $0x28] sm:$0xff] %v422_v5  ;;  %v425_v9 = vpack.c.bf16 %v422_v5, %v422_v5  ;;  %v538_v63 = vadd.f32 %v1130_v57, %v1764_v10 }
  0x87   : > { %742 = vmatmul.mubr.bf16.vlgmr.msra.gmra.mxu0 %v1302_v58  ;;  %v1304_v12 = vld [vmem:[#allocation2 + $0x8] sm:$0xff]  }
  0x88   : > { %751 = vmatprep.mubr.bf16.mxu0 %v1549_v3  ;;  %v443_v13 = vmul.f32 0.8, %v433_v6  ;;  %427 = vst [vmem:[#allocation2 + $0x14] sm:$0xf] %v425_v9  ;;  %v434_v14 = vmax.f32 %v433_v6, 0.0 }
  0x89   : > { %v540_v5 = vmul.f32 0.2, %v538_v63 }
  0x8a   : > { %v445_v15 = vadd.f32 %v444_v7, %v443_v13  ;;  %1113 = vst [vmem:[%s1755_s15 + $0x30] sm:$0xff] %v434_v14  ;;  %v437_v18 = vpack.c.bf16 %v434_v14, %v434_v14 }
  0x8c   : > { %v455_v20 = vmul.f32 0.8, %v445_v15  ;;  %439 = vst [vmem:[#allocation2 + $0x18] sm:$0xf] %v437_v18  ;;  %v446_v21 = vmax.f32 %v445_v15, 0.0 }
  0x8e   : > { %v457_v22 = vadd.f32 %v456_v16, %v455_v20  ;;  %1115 = vst [vmem:[%s1755_s15 + $0x38] sm:$0xff] %v446_v21  ;;  %v449_v25 = vpack.c.bf16 %v446_v21, %v446_v21 }
  0x8f   : > { %752 = vmatmul.mubr.bf16.gmra.mxu0 %v1304_v12  ;;  %v1306_v27 = vld [vmem:[#allocation2 + $0x10] sm:$0xff]  }
  0x90   : > { %761 = vmatprep.mubr.bf16.mxu0 %v1549_v3  ;;  %v458_v28 = vmax.f32 %v457_v22, 0.0  ;;  %v467_v29 = vmul.f32 0.8, %v457_v22  ;;  %451 = vst [vmem:[#allocation2 + $0x1c] sm:$0xf] %v449_v25 }
  0x92   : > { %1117 = vst [vmem:[%s1755_s15 + $0x40] sm:$0xff] %v458_v28  ;;  %v461_v30 = vpack.c.bf16 %v458_v28, %v458_v28  ;;  %v469_v31 = vadd.f32 %v468_v23, %v467_v29 }
  0x94   : > { %463 = vst [vmem:[#allocation2 + $0x20] sm:$0xf] %v461_v30  ;;  %v470_v35 = vmax.f32 %v469_v31, 0.0  ;;  %v479_v36 = vmul.f32 0.8, %v469_v31 }
  0x96   : > { %1119 = vst [vmem:[%s1755_s15 + $0x48] sm:$0xff] %v470_v35  ;;  %v473_v37 = vpack.c.bf16 %v470_v35, %v470_v35  ;;  %v481_v38 = vadd.f32 %v480_v32, %v479_v36 }
  0x97   : > { %762 = vmatmul.mubr.bf16.gmra.mxu0 %v1306_v27  ;;  %v1308_v42 = vld [vmem:[#allocation2 + $0x18] sm:$0xff]  }
  0x98   : > { %771 = vmatprep.mubr.bf16.mxu0 %v1549_v3  ;;  %475 = vst [vmem:[#allocation2 + $0x24] sm:$0xf] %v473_v37  ;;  %v482_v43 = vmax.f32 %v481_v38, 0.0  ;;  %v491_v44 = vmul.f32 0.8, %v481_v38 }
  0x9a   : > { %1121 = vst [vmem:[%s1755_s15 + $0x50] sm:$0xff] %v482_v43  ;;  %v485_v45 = vpack.c.bf16 %v482_v43, %v482_v43  ;;  %v493_v46 = vadd.f32 %v492_v39, %v491_v44 }
  0x9c   : > { %487 = vst [vmem:[#allocation2 + $0x28] sm:$0xf] %v485_v45  ;;  %v494_v50 = vmax.f32 %v493_v46, 0.0  ;;  %v503_v51 = vmul.f32 0.8, %v493_v46 }
  0x9e   : > { %1123 = vst [vmem:[%s1755_s15 + $0x58] sm:$0xff] %v494_v50  ;;  %v497_v52 = vpack.c.bf16 %v494_v50, %v494_v50  ;;  %v505_v53 = vadd.f32 %v504_v47, %v503_v51 }
  0x9f   : > { %772 = vmatmul.mubr.bf16.gmra.mxu0 %v1308_v42  ;;  %v1303_v56 = vld [vmem:[#allocation2 + $0x20] sm:$0xff]  }
  0xa0   : > { %499 = vst [vmem:[#allocation2 + $0x2c] sm:$0xf] %v497_v52  ;;  %v506_v58 = vmax.f32 %v505_v53, 0.0  ;;  %v515_v59 = vmul.f32 0.8, %v505_v53  ;;  %782 = vmatmul.mubr.bf16.vlgmr.msra.gmra.mxu1 %v1303_v56 }
  0xa1   : > { %791 = vmatprep.mubr.bf16.mxu1 %v1549_v3 }
  0xa2   : > { %1125 = vst [vmem:[%s1755_s15 + $0x60] sm:$0xff] %v506_v58  ;;  %v509_v60 = vpack.c.bf16 %v506_v58, %v506_v58  ;;  %v517_v61 = vadd.f32 %v516_v54, %v515_v59 }
  0xa4   : > { %511 = vst [vmem:[#allocation2 + $0x30] sm:$0xf] %v509_v60  ;;  %v518_v0 = vmax.f32 %v517_v61, 0.0  ;;  %v527_v1 = vmul.f32 0.8, %v517_v61 }
  0xa6   : > { %1127 = vst [vmem:[%s1755_s15 + $0x68] sm:$0xff] %v518_v0  ;;  %v521_v2 = vpack.c.bf16 %v518_v0, %v518_v0  ;;  %v529_v4 = vadd.f32 %v528_v62, %v527_v1 }
  0xa7   : > { %v1305_v6 = vld [vmem:[#allocation2 + $0x28] sm:$0xff]  }
  0xa8   : > { %523 = vst [vmem:[#allocation2 + $0x34] sm:$0xf] %v521_v2  ;;  %v530_v7 = vmax.f32 %v529_v4, 0.0  ;;  %v539_v8 = vmul.f32 0.8, %v529_v4  ;;  %792 = vmatmul.mubr.bf16.gmra.mxu1 %v1305_v6 }
  0xa9   : > { %801 = vmatprep.mubr.bf16.mxu1 %v1549_v3 }
  0xaa   : > { %1129 = vst [vmem:[%s1755_s15 + $0x70] sm:$0xff] %v530_v7  ;;  %v533_v9 = vpack.c.bf16 %v530_v7, %v530_v7  ;;  %v541_v11 = vadd.f32 %v540_v5, %v539_v8 }
  0xac   : > { %535 = vst [vmem:[#allocation2 + $0x38] sm:$0xf] %v533_v9  ;;  %v542_v10 = vmax.f32 %v541_v11, 0.0  ;;  %548 = vst [vmem:[#allocation13] sm:$0xff] %v541_v11 }
  0xae   : > { %1131 = vst [vmem:[%s1755_s15 + $0x78] sm:$0xff] %v542_v10  ;;  %v545_v12 = vpack.c.bf16 %v542_v10, %v542_v10 }
  0xaf   : > { %v1307_v13 = vld [vmem:[#allocation2 + $0x30] sm:$0xff]  }
  0xb0   : > { %547 = vst [vmem:[#allocation2 + $0x3c] sm:$0xf] %v545_v12  ;;  %802 = vmatmul.mubr.bf16.gmra.mxu1 %v1307_v13 }
  0xb1   : > { %811 = vmatprep.mubr.bf16.mxu1 %v1549_v3 }
  0xb7   : > { %v1309_v14 = vld [vmem:[#allocation2 + $0x38] sm:$0xff]  }
  0xb8   : > { %812 = vmatmul.mubr.bf16.gmra.mxu1 %v1309_v14 }
  0xb9   : > { %1403 = shalt.err (!%p1400_p6)
}
  0xba   : > { %p2022_p11 = pmov %p2021_p4  ;;  %s1170_s9 = sshll.u32 %s1617_s28, 11 }
  0xbb   : > { %s878_s23 = sshll.u32 %s1751_s1, 4  ;;  %s894_s11 = sshll.u32 %s1753_s26, 4  ;;  %s1867_s23 = int_to_ptr.vmem [resolvable:$true] %s878_s23  ;;  %s1880_s11 = int_to_ptr.vmem [resolvable:$true] %s894_s11 }
  0xbc   : > { %1203 = dma.vmem_to_hbm [thread:$0]  (%p2022_p11), %s925_s20, 128, %s1993_s7, [#allocation14]  }
  0xbd   : > { %s910_s21 = sshll.u32 %s1755_s15, 4  ;;  %s1865_s12 = scalar_lea.hbm %s1990_s4, %s1170_s9  ;;  %s1882_s21 = int_to_ptr.vmem [resolvable:$true] %s910_s21 }
  0xbe   : > { %s1872_s20 = scalar_lea.hbm %s1991_s5, %s1170_s9  ;;  %s1877_s15 = scalar_lea.hbm %s1992_s6, %s1170_s9 }
  0xbf   : > { %s855_s8 = scalar_lea.sflag [#allocation5], %s1737_s30  ;;  %s1414_s17 = scalar_lea.vmem %s1867_s23, 2048 }
  0xc0   : > { %p1415_p7 = scmp.ne.s32.totalorder %s1867_s23, %s1414_s17  ;;  %p2023_p13 = scmp.ne.s32.totalorder %s2009_s13, 0 }
  0xc1   : > { %s1551_s29 = smov [#allocation9]  }
  0xc2   : > { %p1416_p3 = pnand %p1415_p7, %p2023_p13  ;;  %s1418_s19 = sshll.u32 %s1551_s29, 4  ;;  %s1419_s19 = int_to_ptr.vmem [resolvable:$false] %s1418_s19 }
  0xc3   : > { %s1420_s16 = scalar_lea.vmem %s1419_s19, 4096  ;;  %p1421_p2 = scmp.lt.s32.totalorder %s1867_s23, %s1419_s19 }
  0xc4   : > { %p1417_p8 = pneg %p1416_p3  ;;  %p1422_p0 = scmp.lt.s32.totalorder %s1420_s16, %s1414_s17 }
  0xc6   : > { %p1423_p4 = por %p1422_p0, %p1421_p2 }
  0xc8   : > { %p1424_p5 = pnand %p1423_p4, %p1417_p8 }
 0x147   : > { %v743_v3 = vpop.f32.mrf.mxu0 }
 0x148   : > { %822 = vst [vmem:[%s1751_s1] sm:$0xff] %v743_v3 }
 0x149   : > { %v745_v15 = vpop.f32.mrf.mxu0 }
 0x14a   : > { %838 = vst [vmem:[%s1753_s26] sm:$0xff] %v745_v15 }
 0x14b   : > { %v747_v16 = vpop.f32.mrf.mxu0 }
 0x14c   : > { %823 = vst [vmem:[%s1751_s1 + $0x8] sm:$0xff] %v747_v16 }
 0x14d   : > { %v749_v17 = vpop.f32.mrf.mxu0 }
 0x14e   : > { %839 = vst [vmem:[%s1753_s26 + $0x8] sm:$0xff] %v749_v17 }
 0x14f   : > { %v753_v18 = vpop.f32.mrf.mxu0 }
 0x150   : > { %824 = vst [vmem:[%s1751_s1 + $0x10] sm:$0xff] %v753_v18 }
 0x151   : > { %v755_v19 = vpop.f32.mrf.mxu0 }
 0x152   : > { %840 = vst [vmem:[%s1753_s26 + $0x10] sm:$0xff] %v755_v19 }
 0x153   : > { %v757_v20 = vpop.f32.mrf.mxu0 }
 0x154   : > { %825 = vst [vmem:[%s1751_s1 + $0x18] sm:$0xff] %v757_v20 }
 0x155   : > { %v759_v21 = vpop.f32.mrf.mxu0 }
 0x156   : > { %841 = vst [vmem:[%s1753_s26 + $0x18] sm:$0xff] %v759_v21 }
 0x157   : > { %v763_v22 = vpop.f32.mrf.mxu0 }
 0x158   : > { %826 = vst [vmem:[%s1751_s1 + $0x20] sm:$0xff] %v763_v22 }
 0x159   : > { %v765_v23 = vpop.f32.mrf.mxu0 }
 0x15a   : > { %842 = vst [vmem:[%s1753_s26 + $0x20] sm:$0xff] %v765_v23 }
 0x15b   : > { %v767_v24 = vpop.f32.mrf.mxu0 }
 0x15c   : > { %827 = vst [vmem:[%s1751_s1 + $0x28] sm:$0xff] %v767_v24 }
 0x15d   : > { %v769_v25 = vpop.f32.mrf.mxu0 }
 0x15e   : > { %843 = vst [vmem:[%s1753_s26 + $0x28] sm:$0xff] %v769_v25 }
 0x15f   : > { %v773_v26 = vpop.f32.mrf.mxu0 }
 0x160   : > { %828 = vst [vmem:[%s1751_s1 + $0x30] sm:$0xff] %v773_v26  ;;  %v783_v30 = vpop.f32.mrf.mxu1 }
 0x161   : > { %v775_v27 = vpop.f32.mrf.mxu0  ;;  %830 = vst [vmem:[%s1751_s1 + $0x40] sm:$0xff] %v783_v30 }
 0x162   : > { %844 = vst [vmem:[%s1753_s26 + $0x30] sm:$0xff] %v775_v27  ;;  %v785_v31 = vpop.f32.mrf.mxu1 }
 0x163   : > { %v777_v28 = vpop.f32.mrf.mxu0  ;;  %846 = vst [vmem:[%s1753_s26 + $0x40] sm:$0xff] %v785_v31 }
 0x164   : > { %829 = vst [vmem:[%s1751_s1 + $0x38] sm:$0xff] %v777_v28  ;;  %v787_v32 = vpop.f32.mrf.mxu1 }
 0x165   : > { %v779_v29 = vpop.f32.mrf.mxu0  ;;  %831 = vst [vmem:[%s1751_s1 + $0x48] sm:$0xff] %v787_v32 }
 0x166   : > { %845 = vst [vmem:[%s1753_s26 + $0x38] sm:$0xff] %v779_v29  ;;  %v789_v33 = vpop.f32.mrf.mxu1 }
 0x167   : > { %847 = vst [vmem:[%s1753_s26 + $0x48] sm:$0xff] %v789_v33 }
 0x168   : > { %v793_v34 = vpop.f32.mrf.mxu1 }
 0x169   : > { %832 = vst [vmem:[%s1751_s1 + $0x50] sm:$0xff] %v793_v34 }
 0x16a   : > { %v795_v35 = vpop.f32.mrf.mxu1 }
 0x16b   : > { %848 = vst [vmem:[%s1753_s26 + $0x50] sm:$0xff] %v795_v35 }
 0x16c   : > { %v797_v36 = vpop.f32.mrf.mxu1 }
 0x16d   : > { %833 = vst [vmem:[%s1751_s1 + $0x58] sm:$0xff] %v797_v36 }
 0x16e   : > { %v799_v37 = vpop.f32.mrf.mxu1 }
 0x16f   : > { %849 = vst [vmem:[%s1753_s26 + $0x58] sm:$0xff] %v799_v37 }
 0x170   : > { %v803_v38 = vpop.f32.mrf.mxu1 }
 0x171   : > { %834 = vst [vmem:[%s1751_s1 + $0x60] sm:$0xff] %v803_v38 }
 0x172   : > { %v805_v39 = vpop.f32.mrf.mxu1 }
 0x173   : > { %850 = vst [vmem:[%s1753_s26 + $0x60] sm:$0xff] %v805_v39 }
 0x174   : > { %v807_v40 = vpop.f32.mrf.mxu1 }
 0x175   : > { %835 = vst [vmem:[%s1751_s1 + $0x68] sm:$0xff] %v807_v40 }
 0x176   : > { %v809_v41 = vpop.f32.mrf.mxu1 }
 0x177   : > { %851 = vst [vmem:[%s1753_s26 + $0x68] sm:$0xff] %v809_v41 }
 0x178   : > { %v813_v42 = vpop.f32.mrf.mxu1 }
 0x179   : > { %836 = vst [vmem:[%s1751_s1 + $0x70] sm:$0xff] %v813_v42 }
 0x17a   : > { %v815_v43 = vpop.f32.mrf.mxu1 }
 0x17b   : > { %852 = vst [vmem:[%s1753_s26 + $0x70] sm:$0xff] %v815_v43 }
 0x17c   : > { %v817_v44 = vpop.f32.mrf.mxu1 }
 0x17d   : > { %837 = vst [vmem:[%s1751_s1 + $0x78] sm:$0xff] %v817_v44 }
 0x17e   : > { %v819_v45 = vpop.f32.mrf.mxu1 }
 0x17f   : > { %1427 = shalt.err (!%p1424_p5)
}
 0x180   : > { %s1428_s1 = scalar_lea.hbm %s1865_s12, 2048  ;;  %s1432_s22 = scalar_lea.hbm %s1990_s4, 8192 }
 0x181   : > { %p1429_p9 = scmp.ne.s32.totalorder %s1865_s12, %s1428_s1  ;;  %p1433_p12 = scmp.lt.s32.totalorder %s1865_s12, %s1990_s4 }
 0x182   : > { %p1434_p6 = scmp.lt.s32.totalorder %s1432_s22, %s1428_s1 }
 0x183   : > { %p1430_p10 = pnand %p1429_p9, %p2023_p13 }
 0x184   : > { %p1435_p11 = por %p1434_p6, %p1433_p12 }
 0x185   : > { %p1431_p1 = pneg %p1430_p10 }
 0x187   : > { %p1436_p7 = pnand %p1435_p11, %p1431_p1 }
 0x189   : > { %1439 = shalt.err (!%p1436_p7)
}
 0x18a   : > { %s1552_s17 = smov 128   ;;  %s1553_s19 = smov 8   ;;  %853 = vst [vmem:[%s1753_s26 + $0x78] sm:$0xff] %v819_v45 }
 0x18b   : > { %1199 = dma.vmem_to_hbm [thread:$0]  (%p2023_p13), %s1867_s23, 2048, %s1865_s12, %s855_s8, %s1552_s17, %s1552_s17, %s1553_s19  }
 0x18c   : > { %s2024_s10 = sand.u32 1, %s1617_s28   ;;  %s1440_s1 = scalar_lea.vmem %s1880_s11, 2048 }
 0x18d   : > { %s1913_s16 = scalar_lea.sflag [#allocation11], %s2024_s10  ;;  %p1441_p3 = scmp.ne.s32.totalorder %s1880_s11, %s1440_s1 }
 0x18e   : > { %s1554_s9 = smov [#allocation10]  }
 0x18f   : > { %p1442_p8 = pnand %p1441_p3, %p2023_p13  ;;  %s1444_s18 = sshll.u32 %s1554_s9, 4  ;;  %s1445_s18 = int_to_ptr.vmem [resolvable:$false] %s1444_s18 }
 0x190   : > { %s1446_s22 = scalar_lea.vmem %s1445_s18, 4096  ;;  %p1447_p0 = scmp.lt.s32.totalorder %s1880_s11, %s1445_s18 }
 0x191   : > { %p1443_p2 = pneg %p1442_p8  ;;  %p1448_p4 = scmp.lt.s32.totalorder %s1446_s22, %s1440_s1 }
 0x193   : > { %p1449_p5 = por %p1448_p4, %p1447_p0 }
 0x195   : > { %p1450_p9 = pnand %p1449_p5, %p1443_p2 }
 0x197   : > { %1453 = shalt.err (!%p1450_p9)
}
 0x198   : > { %s1454_s30 = scalar_lea.hbm %s1872_s20, 2048  ;;  %s1458_s12 = scalar_lea.hbm %s1991_s5, 8192 }
 0x199   : > { %p1455_p10 = scmp.ne.s32.totalorder %s1872_s20, %s1454_s30  ;;  %p1459_p6 = scmp.lt.s32.totalorder %s1872_s20, %s1991_s5 }
 0x19a   : > { %p1460_p11 = scmp.lt.s32.totalorder %s1458_s12, %s1454_s30 }
 0x19b   : > { %p1456_p1 = pnand %p1455_p10, %p2023_p13 }
 0x19c   : > { %p1461_p7 = por %p1460_p11, %p1459_p6 }
 0x19d   : > { %p1457_p12 = pneg %p1456_p1 }
 0x19f   : > { %p1462_p3 = pnand %p1461_p7, %p1457_p12 }
 0x1a1   : > { %1465 = shalt.err (!%p1462_p3)
}
 0x1a2   : > { %1200 = dma.vmem_to_hbm [thread:$0]  (%p2023_p13), %s1880_s11, 2048, %s1872_s20, %s1913_s16, %s1552_s17, %s1552_s17, %s1553_s19  }
 0x1a3   : > { %s1466_s10 = scalar_lea.vmem %s1882_s21, 2048  ;;  %s1555_s1 = smov [#allocation12]  }
 0x1a4   : > { %p1467_p8 = scmp.ne.s32.totalorder %s1882_s21, %s1466_s10  ;;  %s1470_s9 = sshll.u32 %s1555_s1, 4  ;;  %s1471_s9 = int_to_ptr.vmem [resolvable:$false] %s1470_s9 }
 0x1a5   : > { %s1472_s18 = scalar_lea.vmem %s1471_s9, 4096  ;;  %p1473_p4 = scmp.lt.s32.totalorder %s1882_s21, %s1471_s9 }
 0x1a6   : > { %p1468_p2 = pnand %p1467_p8, %p2023_p13  ;;  %p1474_p5 = scmp.lt.s32.totalorder %s1472_s18, %s1466_s10 }
 0x1a8   : > { %p1469_p0 = pneg %p1468_p2  ;;  %p1475_p9 = por %p1474_p5, %p1473_p4 }
 0x1aa   : > { %p1476_p10 = pnand %p1475_p9, %p1469_p0 }
 0x1ac   : > { %1479 = shalt.err (!%p1476_p10)
}
 0x1ad   : > { %s1480_s22 = scalar_lea.hbm %s1877_s15, 2048  ;;  %s1484_s30 = scalar_lea.hbm %s1992_s6, 8192 }
 0x1ae   : > { %p1481_p1 = scmp.ne.s32.totalorder %s1877_s15, %s1480_s22  ;;  %p1485_p11 = scmp.lt.s32.totalorder %s1877_s15, %s1992_s6 }
 0x1af   : > { %p1486_p7 = scmp.lt.s32.totalorder %s1484_s30, %s1480_s22 }
 0x1b0   : > { %p1482_p12 = pnand %p1481_p1, %p2023_p13 }
 0x1b1   : > { %p1487_p3 = por %p1486_p7, %p1485_p11 }
 0x1b2   : > { %p1483_p6 = pneg %p1482_p12 }
 0x1b4   : > { %p1488_p8 = pnand %p1487_p3, %p1483_p6 }
 0x1b6   : > { %1491 = shalt.err (!%p1488_p8)
}
 0x1b7   : > { %1201 = dma.vmem_to_hbm [thread:$0]  (%p2023_p13), %s1882_s21, 2048, %s1877_s15, %s1913_s16, %s1552_s17, %s1552_s17, %s1553_s19  }
 0x1b8   : > { %p2025_p2 = scmp.eq.s32.totalorder %s1617_s28, 3 }
 0x1ba   : > { %1517 = dma.done.wait (%p2025_p2), [#allocation14], 128   ;;  %p2026_p0 = pmov %p2025_p2 }
 0x1bc   : > { %1519 = vsyncadd (%p2026_p0), [#allocation14], 4294967168 }
 0x1bd PF: > { %p1237_p4 = scmp.ge.s32.totalorder %s1542_s27, 2  ;;  %s940_s12 = sand.u32 1, %s1530_s24  }
 0x1be   : > { %p2027_p5 = scmp.ne.s32.totalorder %s2010_s14, 0  ;;  %s941_s13 = scalar_lea.sflag [#allocation5], %s940_s12 }
 0x1c0   : > { %p1221_p9 = pnand %p1237_p4, %p2027_p5 }
 0x1c2   : > { %p1222_p10 = pneg %p1221_p9 }
 0x1c4   : > { %1521 = dma.done.wait (%p1222_p10), %s941_s13, 2048  }
 0x1c5   : > { %1523 = vsyncadd (%p1222_p10), %s941_s13, 4294965248  ;;  %s2028_s8 = sadd.s32 4294967294, %s1542_s27  }
 0x1c6   : > { %s949_s21 = sand.u32 1, %s2028_s8  }
 0x1c7   : > { %s950_s15 = scalar_lea.sflag [#allocation11], %s949_s21 }
 0x1c8   : > { %1525 = dma.done.wait (%p1222_p10), %s950_s15, 4096  }
 0x1c9   : > { %1527 = vsyncadd (%p1222_p10), %s950_s15, 4294963200  ;;  %s2029_s27 = sld [smem:[#allocation21_spill]]  ;;  %s2032_s24 = smov %s1534_s25 }
 0x1ca   : > { %s2030_s28 = sld [smem:[#allocation20_spill]] }
 0x1cb   : > { %s2031_s26 = sld [smem:[#allocation22_spill]] }
 0x1cf   : > { %p26_p13 = scmp.ge.s32.totalorder %s2029_s27, 6  }
 0x1d0   : > { %s2033_s25 = smov %s2030_s28 }
 0x1d1   :  { %28 = sbr.rel (!%p26_p13) target bundleno = 11 (0xb), region = 178 }
 0x1d6   :  { %964 = vsyncpa [#allocation4], 1 }
 0x1d7   :  { %966 = vsyncpa [#allocation4 + $0x1], 1 }
 0x1d8   :  { %967 = vsyncpa [#allocation7], 1 }
 0x1d9   :  { %968 = vsyncpa [#allocation5], 1 }
 0x1da   :  { %970 = vsyncpa [#allocation5 + $0x1], 1 }
 0x1db   :  { %971 = vsyncpa [#allocation11], 1 }
 0x1dc   :  { %973 = vsyncpa [#allocation11 + $0x1], 1 }
 0x1dd   :  { %974 = vsyncpa [#allocation14], 1 }

</bundles_post_ra>
